<compile_context>
chip_gen: v7x
topology: tpu7x:2x2x1
jax: 0.10.0
libtpu: 0.0.40
codegen_flags: <defaults>
</compile_context>

<pallas_src>
import functools

import jax
import jax.numpy as jnp
from jax.experimental import pallas as pl
from jax.experimental.pallas import tpu as pltpu


# ----------------------------------------------------------------------------
# Per-generation VMEM budgeting
# ----------------------------------------------------------------------------
@functools.lru_cache(maxsize=None)
def _vmem_capacity_bytes():
    """Physical VMEM per core (64 MiB v7x, 128 MiB v5e/v6e). Safe fallback."""
    fallback = 64 * 1024 * 1024
    try:
        info = pltpu.get_tpu_info()
        cap = getattr(info, "vmem_capacity_bytes", None)
        return int(cap) if cap else fallback
    except Exception:
        return fallback


def _vmem_limit_bytes():
    return int(0.9 * _vmem_capacity_bytes())


def _vmem_block_budget_bytes():
    return int(0.7 * _vmem_capacity_bytes())


# ----------------------------------------------------------------------------
# Tile / padding helpers
# ----------------------------------------------------------------------------
def _fit_tile(dim, preferred, align):
    """Largest tile <= preferred, multiple of `align`, dividing `dim`.
    Inputs are pre-padded to multiples of `align`, so this never degenerates
    to a single huge block."""
    if dim <= preferred:
        return dim
    t = (preferred // align) * align
    while t >= align:
        if dim % t == 0:
            return t
        t -= align
    return dim


def _fit_time_chunk(T, preferred):
    """Time-chunk size: multiple of 8 dividing T, or T itself if T is small."""
    if T <= preferred:
        return T
    t = (preferred // 8) * 8
    while t >= 8:
        if T % t == 0:
            return t
        t -= 8
    return T


def _pad_axis(x, multiple, axis):
    pad = (-x.shape[axis]) % multiple
    if pad == 0:
        return x
    widths = [(0, 0)] * x.ndim
    widths[axis] = (0, pad)
    return jnp.pad(x, widths)


# ----------------------------------------------------------------------------
# Tiled matmul + bias: out = x @ W + b
# Used for the LSTM input projections (gates_x, bf16 out) and the fc (f32 out).
# ----------------------------------------------------------------------------
def _matmul_bias_inplace_kernel(x_ref, w_ref, b_ref, o_ref):
    # f32 output: accumulate directly into the revisited output block.
    k = pl.program_id(2)

    @pl.when(k == 0)
    def _():
        o_ref[...] = jnp.zeros_like(o_ref)

    o_ref[...] += jnp.dot(x_ref[...], w_ref[...],
                          preferred_element_type=jnp.float32)

    @pl.when(k == pl.num_programs(2) - 1)
    def _():
        o_ref[...] += b_ref[...]


def _matmul_bias_acc_kernel(x_ref, w_ref, b_ref, o_ref, acc_ref):
    # Narrow (bf16) output: accumulate in f32 scratch, cast on the last k step.
    k = pl.program_id(2)

    @pl.when(k == 0)
    def _():
        acc_ref[...] = jnp.zeros_like(acc_ref)

    acc_ref[...] += jnp.dot(x_ref[...], w_ref[...],
                            preferred_element_type=jnp.float32)

    @pl.when(k == pl.num_programs(2) - 1)
    def _():
        o_ref[...] = (acc_ref[...] + b_ref[...]).astype(o_ref.dtype)


def matmul_bias(x, w, b, *, out_dtype=jnp.float32, tn=None, tv=512, tk=512):
    """x: (N, K) activations (bf16 preferred), w: (K, V) bf16, b: (V,) f32.

    Returns (N, V) `out_dtype`.  N/K/V padded to (8, 128, 128) multiples.
    """
    N, K = x.shape
    V = w.shape[1]

    if tn is None:
        # Bigger row tiles on 128-MiB-VMEM chips (v5e/v6e); conservative on v7x.
        tn = 512 if _vmem_capacity_bytes() >= 96 * 1024 * 1024 else 256

    x_bf = x if x.dtype == jnp.bfloat16 else x.astype(jnp.bfloat16)
    w_bf = w if w.dtype == jnp.bfloat16 else w.astype(jnp.bfloat16)
    b2d = b.reshape(1, V).astype(jnp.float32)

    x_p = _pad_axis(_pad_axis(x_bf, 8, 0), 128, 1)
    w_p = _pad_axis(_pad_axis(w_bf, 128, 0), 128, 1)
    b_p = _pad_axis(b2d, 128, 1)
    Np, Kp = x_p.shape
    Vp = w_p.shape[1]

    tn = _fit_tile(Np, tn, 8)
    tv = _fit_tile(Vp, tv, 128)
    tk = _fit_tile(Kp, tk, 128)
    grid = (Np // tn, Vp // tv, Kp // tk)

    if out_dtype == jnp.float32:
        kernel = _matmul_bias_inplace_kernel
        scratch = []
    else:
        kernel = _matmul_bias_acc_kernel
        scratch = [pltpu.VMEM((tn, tv), jnp.float32)]

    out = pl.pallas_call(
        kernel,
        out_shape=jax.ShapeDtypeStruct((Np, Vp), out_dtype),
        grid_spec=pltpu.PrefetchScalarGridSpec(
            num_scalar_prefetch=0,
            grid=grid,
            in_specs=[
                pl.BlockSpec((tn, tk), lambda i, j, k: (i, k)),
                pl.BlockSpec((tk, tv), lambda i, j, k: (k, j)),
                pl.BlockSpec((1, tv), lambda i, j, k: (0, j)),
            ],
            out_specs=pl.BlockSpec((tn, tv), lambda i, j, k: (i, j)),
            scratch_shapes=scratch,
        ),
        compiler_params=pltpu.CompilerParams(
            dimension_semantics=("parallel", "parallel", "arbitrary"),
            vmem_limit_bytes=_vmem_limit_bytes(),
        ),
    )(x_p, w_p, b_p)

    if (Np, Vp) != (N, V):
        out = out[:N, :V]
    return out


# ----------------------------------------------------------------------------
# LSTM recurrence kernel.
# gates_x = x @ W_ih + b is precomputed (hoisted out of the recurrence).
# Grid = (batch chunks [parallel], time chunks [arbitrary]).  h/c carries live
# directly in the h_n / c_n output blocks (constant index over time -> VMEM
# resident).  W_hh is staged once per batch-chunk into single-buffered VMEM.
# ----------------------------------------------------------------------------
def _lstm_recurrence_kernel(gx_ref, whh_hbm, out_ref, hN_ref, cN_ref,
                            whh_vmem, *, chunk):
    ci = pl.program_id(1)                       # time-chunk index (innermost)

    @pl.when(ci == 0)
    def _():
        # Stage W_hh once per batch-chunk (single-buffered; no double-buffer
        # VMEM cost since the block never changes).
        pltpu.sync_copy(whh_hbm, whh_vmem)
        hN_ref[...] = jnp.zeros_like(hN_ref)
        cN_ref[...] = jnp.zeros_like(cN_ref)

    H = hN_ref.shape[-1]
    w_hh = whh_vmem[...]                        # (H, 4H) bf16
    h = hN_ref[...]                             # (Bc, H) f32 carry
    c = cN_ref[...]                             # (Bc, H) f32 carry

    # Statically unrolled chunk; only the (Bc,H)@(H,4H) recurrent matmul stays
    # on the serial critical path.
    # TODO(synk): at large B*H switch to lax.fori_loop(..., unroll=8) if the
    # bundle dump shows vreg spills; optionally keep W_hh weight-stationary on
    # the MXU (pltpu.matmul_push_rhs / matmul_acc_lhs) once staging-register
    # fit is verified; pad H to a multiple of 128 for lane-aligned gate slices.
    for s in range(chunk):
        gates = gx_ref[:, s, :].astype(jnp.float32) + jnp.dot(
            h.astype(w_hh.dtype), w_hh, preferred_element_type=jnp.float32)
        i = jax.nn.sigmoid(gates[:, 0 * H:1 * H])
        f = jax.nn.sigmoid(gates[:, 1 * H:2 * H])
        g = jnp.tanh(gates[:, 2 * H:3 * H])
        o = jax.nn.sigmoid(gates[:, 3 * H:4 * H])
        c = f * c + i * g
        h = o * jnp.tanh(c)
        out_ref[:, s, :] = h.astype(out_ref.dtype)

    hN_ref[...] = h
    cN_ref[...] = c


def _pick_chunks(B, T, H, budget_bytes, preferred_tc):
    """Pick (batch_chunk, time_chunk) so the per-step VMEM blocks fit budget."""
    # Batch-parallel split (2 chunks) for v7x megacore, kept sublane-aligned.
    bc = B // 2 if (B % 16 == 0) else B
    # Double-buffered bf16 gates_x + bf16 out blocks, per timestep.
    per_t = 2 * bc * (4 * H + H) * 2
    fixed = 2 * H * 4 * H                       # W_hh bf16, single buffer
    fixed += 4 * bc * H * 4                     # h_n / c_n f32 blocks
    avail = budget_bytes - fixed
    max_tc = max(avail // max(per_t, 1), 8)
    tc = _fit_time_chunk(T, int(min(preferred_tc, max_tc)))
    return bc, tc


def lstm_recurrence(gates_x, w_hh, *, time_chunk=32):
    """gates_x: (B, T, 4H) (x@W_ih + b precomputed, batch-first).

    Returns (out (B,T,H) bf16, h_n (B,H) f32, c_n (B,H) f32).
    """
    B, T, H4 = gates_x.shape
    H = H4 // 4
    bc, tc = _pick_chunks(B, T, H, _vmem_block_budget_bytes(), time_chunk)
    kernel = functools.partial(_lstm_recurrence_kernel, chunk=tc)

    gx_bf = gates_x if gates_x.dtype == jnp.bfloat16 else gates_x.astype(jnp.bfloat16)
    whh_bf = w_hh if w_hh.dtype == jnp.bfloat16 else w_hh.astype(jnp.bfloat16)

    out_shapes = (
        jax.ShapeDtypeStruct((B, T, H), jnp.bfloat16),   # sequence output
        jax.ShapeDtypeStruct((B, H), jnp.float32),       # h_n
        jax.ShapeDtypeStruct((B, H), jnp.float32),       # c_n
    )
    # TODO(synk): overlap the next layer's x@W_ih projection with this layer's
    # recurrence (per-chunk fusion / emit_pipeline) to keep the MXU busy during
    # the latency-bound recurrence; optional fp8 W_ih / fc_w on v7x.
    return pl.pallas_call(
        kernel,
        out_shape=out_shapes,
        grid_spec=pltpu.PrefetchScalarGridSpec(
            num_scalar_prefetch=0,
            grid=(B // bc, T // tc),                     # (batch, time)
            in_specs=[
                pl.BlockSpec((bc, tc, 4 * H), lambda bi, ci: (bi, ci, 0)),
                pl.BlockSpec(memory_space=pl.ANY),       # W_hh stays in HBM
            ],
            out_specs=[
                pl.BlockSpec((bc, tc, H), lambda bi, ci: (bi, ci, 0)),
                pl.BlockSpec((bc, H), lambda bi, ci: (bi, 0)),   # h_n = carry
                pl.BlockSpec((bc, H), lambda bi, ci: (bi, 0)),   # c_n = carry
            ],
            scratch_shapes=[
                pltpu.VMEM((H, 4 * H), jnp.bfloat16),    # W_hh, single buffer
            ],
        ),
        compiler_params=pltpu.CompilerParams(
            dimension_semantics=("parallel", "arbitrary"),
            vmem_limit_bytes=_vmem_limit_bytes(),
        ),
    )(gx_bf, whh_bf)


# ----------------------------------------------------------------------------
# Full model
# ----------------------------------------------------------------------------
def init_params(key, vocab_size, embed_size, hidden_size, num_layers):
    params = {}
    k = key

    def nxt():
        nonlocal k
        k, sub = jax.random.split(k)
        return sub

    # Embedding table in bf16 so the layer-0 input needs no wrapper-side cast.
    params["embed"] = (jax.random.normal(nxt(), (vocab_size, embed_size),
                                         jnp.float32) * 0.1).astype(jnp.bfloat16)
    layers = []
    for layer in range(num_layers):
        in_dim = embed_size if layer == 0 else hidden_size
        layers.append({
            # Stored transposed relative to PyTorch (weight_ih: (4H, in)) so the
            # kernels do x @ W directly; gate order i,f,g,o preserved.
            "w_ih": (jax.random.normal(nxt(), (in_dim, 4 * hidden_size),
                                       jnp.float32) * 0.1).astype(jnp.bfloat16),
            "w_hh": (jax.random.normal(nxt(), (hidden_size, 4 * hidden_size),
                                       jnp.float32) * 0.1).astype(jnp.bfloat16),
            # b_ih + b_hh folded into one bias vector (identical math).
            "bias": jax.random.normal(nxt(), (4 * hidden_size,),
                                      jnp.float32) * 0.1,
        })
    params["lstm"] = layers
    params["fc_w"] = (jax.random.normal(nxt(), (hidden_size, vocab_size),
                                        jnp.float32) * 0.1).astype(jnp.bfloat16)
    params["fc_b"] = jax.random.normal(nxt(), (vocab_size,), jnp.float32) * 0.1
    return params


@jax.jit
def lstm_model_forward(params, x_tokens):
    """x_tokens: (B, T) int32. Returns (logits (B,T,V) f32, (h_n, c_n) f32)."""
    B, T = x_tokens.shape
    # Embedding lookup (glue — gather stays in plain JAX), batch-first and bf16.
    emb = jnp.take(params["embed"], x_tokens, axis=0)            # (B, T, E)

    layer_in = emb
    h_list, c_list = [], []
    for lp in params["lstm"]:
        in_dim = layer_in.shape[-1]
        # Hoisted input projection: one big MXU matmul over all B*T rows,
        # emitted directly in bf16 (largest intermediate, halves HBM traffic).
        gates_x = matmul_bias(layer_in.reshape(B * T, in_dim),
                              lp["w_ih"], lp["bias"],
                              out_dtype=jnp.bfloat16)            # (B*T, 4H)
        gates_x = gates_x.reshape(B, T, -1)                      # (B, T, 4H)
        # Sequential recurrence: only h @ W_hh per timestep.
        layer_in, h_n, c_n = lstm_recurrence(gates_x, lp["w_hh"])
        h_list.append(h_n)
        c_list.append(c_n)

    H = layer_in.shape[-1]
    logits = matmul_bias(layer_in.reshape(B * T, H),
                         params["fc_w"], params["fc_b"],
                         out_dtype=jnp.float32)                  # (B*T, V)
    logits = logits.reshape(B, T, -1)                            # (B, T, V)

    h_n = jnp.stack(h_list, axis=0)                              # (L, B, H)
    c_n = jnp.stack(c_list, axis=0)
    return logits, (h_n, c_n)


if __name__ == "__main__":
    vocab_size, embed_size, hidden_size, num_layers = 128, 32, 32, 2
    B, T = 2, 8

    key = jax.random.PRNGKey(0)
    pkey, xkey = jax.random.split(key)
    params = init_params(pkey, vocab_size, embed_size, hidden_size, num_layers)
    x = jax.random.randint(xkey, (B, T), 0, vocab_size, dtype=jnp.int32)

    logits, (h_n, c_n) = lstm_model_forward(params, x)
    jax.block_until_ready((logits, h_n, c_n))

    assert logits.shape == (B, T, vocab_size)
    assert h_n.shape == (num_layers, B, hidden_size)
    assert c_n.shape == (num_layers, B, hidden_size)
    assert bool(jnp.all(jnp.isfinite(logits)))
    print("KERNEL_OK")
</pallas_src>

<mosaic_0001>
module attributes {stable_mosaic.version = 11 : i64} {
  func.func @_matmul_bias_acc_kernel(%arg0: i32, %arg1: i32, %arg2: i32, %arg3: memref<16x128xbf16, #tpu.memory_space<vmem>>, %arg4: memref<128x128xbf16, #tpu.memory_space<vmem>>, %arg5: memref<1x128xf32, #tpu.memory_space<vmem>>, %arg6: memref<16x128xbf16, #tpu.memory_space<vmem>>, %arg7: memref<16x128xf32, #tpu.memory_space<vmem>>) attributes {dimension_semantics = [#tpu.dimension_semantics<parallel>, #tpu.dimension_semantics<parallel>, #tpu.dimension_semantics<arbitrary>], iteration_bounds = array<i64: 1, 1, 1>, scalar_prefetch = 0 : i64, scratch_operands = 1 : i64, tpu.core_type = #tpu.core_type<tc>, window_params = [{transform_indices = @transform_0, window_bounds = array<i64: 16, 128>}, {transform_indices = @transform_1, window_bounds = array<i64: 128, 128>}, {transform_indices = @transform_2, window_bounds = array<i64: 1, 128>}, {transform_indices = @transform_3, window_bounds = array<i64: 16, 128>}]} {
    %c0_i32 = arith.constant 0 : i32
    %0 = arith.cmpi eq, %arg2, %c0_i32 : i32
    %1 = arith.extui %0 : i1 to i32
    %c0_i32_0 = arith.constant 0 : i32
    %2 = arith.cmpi ne, %1, %c0_i32_0 : i32
    scf.if %2 {
      %cst_10 = arith.constant 0.000000e+00 : f32
      %12 = vector.broadcast %cst_10 : f32 to vector<16x128xf32>
      %c0_11 = arith.constant 0 : index
      %c0_12 = arith.constant 0 : index
      %13 = vector.load %arg7[%c0_11, %c0_12] : memref<16x128xf32, #tpu.memory_space<vmem>>, vector<16x128xf32>
      tpu.vector_store %arg7[%c0_11, %c0_12], %12 {strides = array<i32>} : memref<16x128xf32, #tpu.memory_space<vmem>>, vector<16x128xf32>,
    } else {
    }
    %c0 = arith.constant 0 : index
    %c0_1 = arith.constant 0 : index
    %3 = vector.load %arg7[%c0, %c0_1] : memref<16x128xf32, #tpu.memory_space<vmem>>, vector<16x128xf32>
    %c0_2 = arith.constant 0 : index
    %c0_3 = arith.constant 0 : index
    %4 = vector.load %arg3[%c0_2, %c0_3] : memref<16x128xbf16, #tpu.memory_space<vmem>>, vector<16x128xbf16>
    %c0_4 = arith.constant 0 : index
    %c0_5 = arith.constant 0 : index
    %5 = vector.load %arg4[%c0_4, %c0_5] : memref<128x128xbf16, #tpu.memory_space<vmem>>, vector<128x128xbf16>
    %cst = arith.constant dense<0.000000e+00> : vector<16x128xf32>
    %6 = tpu.matmul %4, %5, %cst {dimension_numbers = #tpu.dot_dimension_numbers<[1], [0], [0], [1], [0, 0, 1, 1], [], []>} : vector<16x128xbf16>, vector<128x128xbf16>, vector<16x128xf32> -> vector<16x128xf32>
    %7 = arith.addf %3, %6 : vector<16x128xf32>
    %c0_6 = arith.constant 0 : index
    %c0_7 = arith.constant 0 : index
    %8 = vector.load %arg7[%c0_6, %c0_7] : memref<16x128xf32, #tpu.memory_space<vmem>>, vector<16x128xf32>
    tpu.vector_store %arg7[%c0_6, %c0_7], %7 {strides = array<i32>} : memref<16x128xf32, #tpu.memory_space<vmem>>, vector<16x128xf32>,
    %c0_i32_8 = arith.constant 0 : i32
    %9 = arith.cmpi eq, %arg2, %c0_i32_8 : i32
    %10 = arith.extui %9 : i1 to i32
    %c0_i32_9 = arith.constant 0 : i32
    %11 = arith.cmpi ne, %10, %c0_i32_9 : i32
    scf.if %11 {
      %c0_10 = arith.constant 0 : index
      %c0_11 = arith.constant 0 : index
      %12 = vector.load %arg7[%c0_10, %c0_11] : memref<16x128xf32, #tpu.memory_space<vmem>>, vector<16x128xf32>
      %c0_12 = arith.constant 0 : index
      %c0_13 = arith.constant 0 : index
      %13 = vector.load %arg5[%c0_12, %c0_13] : memref<1x128xf32, #tpu.memory_space<vmem>>, vector<1x128xf32>
      %14 = vector.broadcast %13 : vector<1x128xf32> to vector<16x128xf32>
      %15 = arith.addf %12, %14 : vector<16x128xf32>
      %16 = arith.truncf %15 : vector<16x128xf32> to vector<16x128xbf16>
      %c0_14 = arith.constant 0 : index
      %c0_15 = arith.constant 0 : index
      %17 = vector.load %arg6[%c0_14, %c0_15] : memref<16x128xbf16, #tpu.memory_space<vmem>>, vector<16x128xbf16>
      tpu.vector_store %arg6[%c0_14, %c0_15], %16 {strides = array<i32>} : memref<16x128xbf16, #tpu.memory_space<vmem>>, vector<16x128xbf16>,
    } else {
    }
    return
  }
  func.func @transform_0(%arg0: i32, %arg1: i32, %arg2: i32) -> (i32, i32) {
    %c0_i32 = arith.constant 0 : i32
    return %arg0, %arg2 : i32, i32
  }
  func.func @transform_1(%arg0: i32, %arg1: i32, %arg2: i32) -> (i32, i32) {
    %c0_i32 = arith.constant 0 : i32
    return %arg2, %arg1 : i32, i32
  }
  func.func @transform_2(%arg0: i32, %arg1: i32, %arg2: i32) -> (i32, i32) {
    %c0_i32 = arith.constant 0 : i32
    %c0_i32_0 = arith.constant 0 : i32
    return %c0_i32, %arg1 : i32, i32
  }
  func.func @transform_3(%arg0: i32, %arg1: i32, %arg2: i32) -> (i32, i32) {
    %c0_i32 = arith.constant 0 : i32
    return %arg0, %arg1 : i32, i32
  }
}

module attributes {stable_mosaic.version = 11 : i64} {
  func.func @_lstm_recurrence_kernel(%arg0: i32, %arg1: i32, %arg2: memref<2x8x128xbf16, #tpu.memory_space<vmem>>, %arg3: memref<32x128xbf16, #tpu.memory_space<any>>, %arg4: memref<2x8x32xbf16, #tpu.memory_space<vmem>>, %arg5: memref<2x32xf32, #tpu.memory_space<vmem>>, %arg6: memref<2x32xf32, #tpu.memory_space<vmem>>, %arg7: memref<32x128xbf16, #tpu.memory_space<vmem>>) attributes {dimension_semantics = [#tpu.dimension_semantics<parallel>, #tpu.dimension_semantics<arbitrary>], iteration_bounds = array<i64: 1, 1>, scalar_prefetch = 0 : i64, scratch_operands = 1 : i64, tpu.core_type = #tpu.core_type<tc>, window_params = [{transform_indices = @transform_0, window_bounds = array<i64: 2, 8, 128>}, {}, {transform_indices = @transform_2, window_bounds = array<i64: 2, 8, 32>}, {transform_indices = @transform_3, window_bounds = array<i64: 2, 32>}, {transform_indices = @transform_4, window_bounds = array<i64: 2, 32>}]} {
    %c0_i32 = arith.constant 0 : i32
    %0 = arith.cmpi eq, %arg1, %c0_i32 : i32
    %1 = arith.extui %0 : i1 to i32
    %c0_i32_0 = arith.constant 0 : i32
    %2 = arith.cmpi ne, %1, %c0_i32_0 : i32
    scf.if %2 {
      "tpu.region"() ({
        %292 = tpu.sem_alloc : memref<!tpu.dma_semaphore, #tpu.memory_space<semaphore_mem>>
        tpu.enqueue_dma source(%arg3 : memref<32x128xbf16, #tpu.memory_space<any>>) target(%arg7 : memref<32x128xbf16, #tpu.memory_space<vmem>>) target_semaphore(%292 : memref<!tpu.dma_semaphore, #tpu.memory_space<semaphore_mem>>)
        tpu.wait_dma2 semaphore(%292 : memref<!tpu.dma_semaphore, #tpu.memory_space<semaphore_mem>>) src(%arg3 : memref<32x128xbf16, #tpu.memory_space<any>>) dst(%arg7 : memref<32x128xbf16, #tpu.memory_space<vmem>>)
        tpu.yield
      }) : () -> ()
      %cst_82 = arith.constant 0.000000e+00 : f32
      %288 = vector.broadcast %cst_82 : f32 to vector<2x32xf32>
      %c0_83 = arith.constant 0 : index
      %c0_84 = arith.constant 0 : index
      %289 = vector.load %arg5[%c0_83, %c0_84] : memref<2x32xf32, #tpu.memory_space<vmem>>, vector<2x32xf32>
      tpu.vector_store %arg5[%c0_83, %c0_84], %288 {strides = array<i32>} : memref<2x32xf32, #tpu.memory_space<vmem>>, vector<2x32xf32>,
      %cst_85 = arith.constant 0.000000e+00 : f32
      %290 = vector.broadcast %cst_85 : f32 to vector<2x32xf32>
      %c0_86 = arith.constant 0 : index
      %c0_87 = arith.constant 0 : index
      %291 = vector.load %arg6[%c0_86, %c0_87] : memref<2x32xf32, #tpu.memory_space<vmem>>, vector<2x32xf32>
      tpu.vector_store %arg6[%c0_86, %c0_87], %290 {strides = array<i32>} : memref<2x32xf32, #tpu.memory_space<vmem>>, vector<2x32xf32>,
    } else {
    }
    %c0 = arith.constant 0 : index
    %c0_1 = arith.constant 0 : index
    %3 = vector.load %arg7[%c0, %c0_1] : memref<32x128xbf16, #tpu.memory_space<vmem>>, vector<32x128xbf16>
    %c0_2 = arith.constant 0 : index
    %c0_3 = arith.constant 0 : index
    %4 = vector.load %arg5[%c0_2, %c0_3] : memref<2x32xf32, #tpu.memory_space<vmem>>, vector<2x32xf32>
    %c0_4 = arith.constant 0 : index
    %c0_5 = arith.constant 0 : index
    %5 = vector.load %arg6[%c0_4, %c0_5] : memref<2x32xf32, #tpu.memory_space<vmem>>, vector<2x32xf32>
    %c0_6 = arith.constant 0 : index
    %c0_7 = arith.constant 0 : index
    %c0_8 = arith.constant 0 : index
    %6 = vector.load %arg2[%c0_6, %c0_7, %c0_8] : memref<2x8x128xbf16, #tpu.memory_space<vmem>>, vector<2x1x128xbf16>
    %7 = vector.shape_cast %6 : vector<2x1x128xbf16> to vector<2x128xbf16>
    %8 = arith.extf %7 : vector<2x128xbf16> to vector<2x128xf32>
    %9 = arith.truncf %4 : vector<2x32xf32> to vector<2x32xbf16>
    %cst = arith.constant dense<0.000000e+00> : vector<2x128xf32>
    %10 = tpu.matmul %9, %3, %cst {dimension_numbers = #tpu.dot_dimension_numbers<[1], [0], [0], [1], [0, 0, 1, 1], [], []>} : vector<2x32xbf16>, vector<32x128xbf16>, vector<2x128xf32> -> vector<2x128xf32>
    %11 = arith.addf %8, %10 : vector<2x128xf32>
    %12 = vector.extract_strided_slice %11 {offsets = [0, 0], sizes = [2, 32], strides = [1, 1]} : vector<2x128xf32> to vector<2x32xf32>
    %13 = arith.negf %12 : vector<2x32xf32>
    %14 = math.exp %13 : vector<2x32xf32>
    %cst_9 = arith.constant 1.000000e+00 : f32
    %15 = vector.broadcast %cst_9 : f32 to vector<2x32xf32>
    %16 = arith.addf %15, %14 : vector<2x32xf32>
    %17 = arith.divf %15, %16 : vector<2x32xf32>
    %18 = vector.extract_strided_slice %11 {offsets = [0, 32], sizes = [2, 32], strides = [1, 1]} : vector<2x128xf32> to vector<2x32xf32>
    %19 = arith.negf %18 : vector<2x32xf32>
    %20 = math.exp %19 : vector<2x32xf32>
    %cst_10 = arith.constant 1.000000e+00 : f32
    %21 = vector.broadcast %cst_10 : f32 to vector<2x32xf32>
    %22 = arith.addf %21, %20 : vector<2x32xf32>
    %23 = arith.divf %21, %22 : vector<2x32xf32>
    %24 = vector.extract_strided_slice %11 {offsets = [0, 64], sizes = [2, 32], strides = [1, 1]} : vector<2x128xf32> to vector<2x32xf32>
    %25 = math.tanh %24 : vector<2x32xf32>
    %26 = vector.extract_strided_slice %11 {offsets = [0, 96], sizes = [2, 32], strides = [1, 1]} : vector<2x128xf32> to vector<2x32xf32>
    %27 = arith.negf %26 : vector<2x32xf32>
    %28 = math.exp %27 : vector<2x32xf32>
    %cst_11 = arith.constant 1.000000e+00 : f32
    %29 = vector.broadcast %cst_11 : f32 to vector<2x32xf32>
    %30 = arith.addf %29, %28 : vector<2x32xf32>
    %31 = arith.divf %29, %30 : vector<2x32xf32>
    %32 = arith.mulf %23, %5 : vector<2x32xf32>
    %33 = arith.mulf %17, %25 : vector<2x32xf32>
    %34 = arith.addf %32, %33 : vector<2x32xf32>
    %35 = math.tanh %34 : vector<2x32xf32>
    %36 = arith.mulf %31, %35 : vector<2x32xf32>
    %37 = arith.truncf %36 : vector<2x32xf32> to vector<2x32xbf16>
    %c0_12 = arith.constant 0 : index
    %c0_13 = arith.constant 0 : index
    %c0_14 = arith.constant 0 : index
    %38 = vector.load %arg4[%c0_12, %c0_13, %c0_14] : memref<2x8x32xbf16, #tpu.memory_space<vmem>>, vector<2x1x32xbf16>
    %39 = vector.shape_cast %38 : vector<2x1x32xbf16> to vector<2x32xbf16>
    %40 = vector.shape_cast %37 : vector<2x32xbf16> to vector<2x1x32xbf16>
    tpu.vector_store %arg4[%c0_12, %c0_13, %c0_14], %40 {strides = array<i32>} : memref<2x8x32xbf16, #tpu.memory_space<vmem>>, vector<2x1x32xbf16>,
    %c0_15 = arith.constant 0 : index
    %c1 = arith.constant 1 : index
    %c0_16 = arith.constant 0 : index
    %41 = vector.load %arg2[%c0_15, %c1, %c0_16] : memref<2x8x128xbf16, #tpu.memory_space<vmem>>, vector<2x1x128xbf16>
    %42 = vector.shape_cast %41 : vector<2x1x128xbf16> to vector<2x128xbf16>
    %43 = arith.extf %42 : vector<2x128xbf16> to vector<2x128xf32>
    %44 = arith.truncf %36 : vector<2x32xf32> to vector<2x32xbf16>
    %cst_17 = arith.constant dense<0.000000e+00> : vector<2x128xf32>
    %45 = tpu.matmul %44, %3, %cst_17 {dimension_numbers = #tpu.dot_dimension_numbers<[1], [0], [0], [1], [0, 0, 1, 1], [], []>} : vector<2x32xbf16>, vector<32x128xbf16>, vector<2x128xf32> -> vector<2x128xf32>
    %46 = arith.addf %43, %45 : vector<2x128xf32>
    %47 = vector.extract_strided_slice %46 {offsets = [0, 0], sizes = [2, 32], strides = [1, 1]} : vector<2x128xf32> to vector<2x32xf32>
    %48 = arith.negf %47 : vector<2x32xf32>
    %49 = math.exp %48 : vector<2x32xf32>
    %cst_18 = arith.constant 1.000000e+00 : f32
    %50 = vector.broadcast %cst_18 : f32 to vector<2x32xf32>
    %51 = arith.addf %50, %49 : vector<2x32xf32>
    %52 = arith.divf %50, %51 : vector<2x32xf32>
    %53 = vector.extract_strided_slice %46 {offsets = [0, 32], sizes = [2, 32], strides = [1, 1]} : vector<2x128xf32> to vector<2x32xf32>
    %54 = arith.negf %53 : vector<2x32xf32>
    %55 = math.exp %54 : vector<2x32xf32>
    %cst_19 = arith.constant 1.000000e+00 : f32
    %56 = vector.broadcast %cst_19 : f32 to vector<2x32xf32>
    %57 = arith.addf %56, %55 : vector<2x32xf32>
    %58 = arith.divf %56, %57 : vector<2x32xf32>
    %59 = vector.extract_strided_slice %46 {offsets = [0, 64], sizes = [2, 32], strides = [1, 1]} : vector<2x128xf32> to vector<2x32xf32>
    %60 = math.tanh %59 : vector<2x32xf32>
    %61 = vector.extract_strided_slice %46 {offsets = [0, 96], sizes = [2, 32], strides = [1, 1]} : vector<2x128xf32> to vector<2x32xf32>
    %62 = arith.negf %61 : vector<2x32xf32>
    %63 = math.exp %62 : vector<2x32xf32>
    %cst_20 = arith.constant 1.000000e+00 : f32
    %64 = vector.broadcast %cst_20 : f32 to vector<2x32xf32>
    %65 = arith.addf %64, %63 : vector<2x32xf32>
    %66 = arith.divf %64, %65 : vector<2x32xf32>
    %67 = arith.mulf %58, %34 : vector<2x32xf32>
    %68 = arith.mulf %52, %60 : vector<2x32xf32>
    %69 = arith.addf %67, %68 : vector<2x32xf32>
    %70 = math.tanh %69 : vector<2x32xf32>
    %71 = arith.mulf %66, %70 : vector<2x32xf32>
    %72 = arith.truncf %71 : vector<2x32xf32> to vector<2x32xbf16>
    %c0_21 = arith.constant 0 : index
    %c1_22 = arith.constant 1 : index
    %c0_23 = arith.constant 0 : index
    %73 = vector.load %arg4[%c0_21, %c1_22, %c0_23] : memref<2x8x32xbf16, #tpu.memory_space<vmem>>, vector<2x1x32xbf16>
    %74 = vector.shape_cast %73 : vector<2x1x32xbf16> to vector<2x32xbf16>
    %75 = vector.shape_cast %72 : vector<2x32xbf16> to vector<2x1x32xbf16>
    tpu.vector_store %arg4[%c0_21, %c1_22, %c0_23], %75 {strides = array<i32>} : memref<2x8x32xbf16, #tpu.memory_space<vmem>>, vector<2x1x32xbf16>,
    %c0_24 = arith.constant 0 : index
    %c2 = arith.constant 2 : index
    %c0_25 = arith.constant 0 : index
    %76 = vector.load %arg2[%c0_24, %c2, %c0_25] : memref<2x8x128xbf16, #tpu.memory_space<vmem>>, vector<2x1x128xbf16>
    %77 = vector.shape_cast %76 : vector<2x1x128xbf16> to vector<2x128xbf16>
    %78 = arith.extf %77 : vector<2x128xbf16> to vector<2x128xf32>
    %79 = arith.truncf %71 : vector<2x32xf32> to vector<2x32xbf16>
    %cst_26 = arith.constant dense<0.000000e+00> : vector<2x128xf32>
    %80 = tpu.matmul %79, %3, %cst_26 {dimension_numbers = #tpu.dot_dimension_numbers<[1], [0], [0], [1], [0, 0, 1, 1], [], []>} : vector<2x32xbf16>, vector<32x128xbf16>, vector<2x128xf32> -> vector<2x128xf32>
    %81 = arith.addf %78, %80 : vector<2x128xf32>
    %82 = vector.extract_strided_slice %81 {offsets = [0, 0], sizes = [2, 32], strides = [1, 1]} : vector<2x128xf32> to vector<2x32xf32>
    %83 = arith.negf %82 : vector<2x32xf32>
    %84 = math.exp %83 : vector<2x32xf32>
    %cst_27 = arith.constant 1.000000e+00 : f32
    %85 = vector.broadcast %cst_27 : f32 to vector<2x32xf32>
    %86 = arith.addf %85, %84 : vector<2x32xf32>
    %87 = arith.divf %85, %86 : vector<2x32xf32>
    %88 = vector.extract_strided_slice %81 {offsets = [0, 32], sizes = [2, 32], strides = [1, 1]} : vector<2x128xf32> to vector<2x32xf32>
    %89 = arith.negf %88 : vector<2x32xf32>
    %90 = math.exp %89 : vector<2x32xf32>
    %cst_28 = arith.constant 1.000000e+00 : f32
    %91 = vector.broadcast %cst_28 : f32 to vector<2x32xf32>
    %92 = arith.addf %91, %90 : vector<2x32xf32>
    %93 = arith.divf %91, %92 : vector<2x32xf32>
    %94 = vector.extract_strided_slice %81 {offsets = [0, 64], sizes = [2, 32], strides = [1, 1]} : vector<2x128xf32> to vector<2x32xf32>
    %95 = math.tanh %94 : vector<2x32xf32>
    %96 = vector.extract_strided_slice %81 {offsets = [0, 96], sizes = [2, 32], strides = [1, 1]} : vector<2x128xf32> to vector<2x32xf32>
    %97 = arith.negf %96 : vector<2x32xf32>
    %98 = math.exp %97 : vector<2x32xf32>
    %cst_29 = arith.constant 1.000000e+00 : f32
    %99 = vector.broadcast %cst_29 : f32 to vector<2x32xf32>
    %100 = arith.addf %99, %98 : vector<2x32xf32>
    %101 = arith.divf %99, %100 : vector<2x32xf32>
    %102 = arith.mulf %93, %69 : vector<2x32xf32>
    %103 = arith.mulf %87, %95 : vector<2x32xf32>
    %104 = arith.addf %102, %103 : vector<2x32xf32>
    %105 = math.tanh %104 : vector<2x32xf32>
    %106 = arith.mulf %101, %105 : vector<2x32xf32>
    %107 = arith.truncf %106 : vector<2x32xf32> to vector<2x32xbf16>
    %c0_30 = arith.constant 0 : index
    %c2_31 = arith.constant 2 : index
    %c0_32 = arith.constant 0 : index
    %108 = vector.load %arg4[%c0_30, %c2_31, %c0_32] : memref<2x8x32xbf16, #tpu.memory_space<vmem>>, vector<2x1x32xbf16>
    %109 = vector.shape_cast %108 : vector<2x1x32xbf16> to vector<2x32xbf16>
    %110 = vector.shape_cast %107 : vector<2x32xbf16> to vector<2x1x32xbf16>
    tpu.vector_store %arg4[%c0_30, %c2_31, %c0_32], %110 {strides = array<i32>} : memref<2x8x32xbf16, #tpu.memory_space<vmem>>, vector<2x1x32xbf16>,
    %c0_33 = arith.constant 0 : index
    %c3 = arith.constant 3 : index
    %c0_34 = arith.constant 0 : index
    %111 = vector.load %arg2[%c0_33, %c3, %c0_34] : memref<2x8x128xbf16, #tpu.memory_space<vmem>>, vector<2x1x128xbf16>
    %112 = vector.shape_cast %111 : vector<2x1x128xbf16> to vector<2x128xbf16>
    %113 = arith.extf %112 : vector<2x128xbf16> to vector<2x128xf32>
    %114 = arith.truncf %106 : vector<2x32xf32> to vector<2x32xbf16>
    %cst_35 = arith.constant dense<0.000000e+00> : vector<2x128xf32>
    %115 = tpu.matmul %114, %3, %cst_35 {dimension_numbers = #tpu.dot_dimension_numbers<[1], [0], [0], [1], [0, 0, 1, 1], [], []>} : vector<2x32xbf16>, vector<32x128xbf16>, vector<2x128xf32> -> vector<2x128xf32>
    %116 = arith.addf %113, %115 : vector<2x128xf32>
    %117 = vector.extract_strided_slice %116 {offsets = [0, 0], sizes = [2, 32], strides = [1, 1]} : vector<2x128xf32> to vector<2x32xf32>
    %118 = arith.negf %117 : vector<2x32xf32>
    %119 = math.exp %118 : vector<2x32xf32>
    %cst_36 = arith.constant 1.000000e+00 : f32
    %120 = vector.broadcast %cst_36 : f32 to vector<2x32xf32>
    %121 = arith.addf %120, %119 : vector<2x32xf32>
    %122 = arith.divf %120, %121 : vector<2x32xf32>
    %123 = vector.extract_strided_slice %116 {offsets = [0, 32], sizes = [2, 32], strides = [1, 1]} : vector<2x128xf32> to vector<2x32xf32>
    %124 = arith.negf %123 : vector<2x32xf32>
    %125 = math.exp %124 : vector<2x32xf32>
    %cst_37 = arith.constant 1.000000e+00 : f32
    %126 = vector.broadcast %cst_37 : f32 to vector<2x32xf32>
    %127 = arith.addf %126, %125 : vector<2x32xf32>
    %128 = arith.divf %126, %127 : vector<2x32xf32>
    %129 = vector.extract_strided_slice %116 {offsets = [0, 64], sizes = [2, 32], strides = [1, 1]} : vector<2x128xf32> to vector<2x32xf32>
    %130 = math.tanh %129 : vector<2x32xf32>
    %131 = vector.extract_strided_slice %116 {offsets = [0, 96], sizes = [2, 32], strides = [1, 1]} : vector<2x128xf32> to vector<2x32xf32>
    %132 = arith.negf %131 : vector<2x32xf32>
    %133 = math.exp %132 : vector<2x32xf32>
    %cst_38 = arith.constant 1.000000e+00 : f32
    %134 = vector.broadcast %cst_38 : f32 to vector<2x32xf32>
    %135 = arith.addf %134, %133 : vector<2x32xf32>
    %136 = arith.divf %134, %135 : vector<2x32xf32>
    %137 = arith.mulf %128, %104 : vector<2x32xf32>
    %138 = arith.mulf %122, %130 : vector<2x32xf32>
    %139 = arith.addf %137, %138 : vector<2x32xf32>
    %140 = math.tanh %139 : vector<2x32xf32>
    %141 = arith.mulf %136, %140 : vector<2x32xf32>
    %142 = arith.truncf %141 : vector<2x32xf32> to vector<2x32xbf16>
    %c0_39 = arith.constant 0 : index
    %c3_40 = arith.constant 3 : index
    %c0_41 = arith.constant 0 : index
    %143 = vector.load %arg4[%c0_39, %c3_40, %c0_41] : memref<2x8x32xbf16, #tpu.memory_space<vmem>>, vector<2x1x32xbf16>
    %144 = vector.shape_cast %143 : vector<2x1x32xbf16> to vector<2x32xbf16>
    %145 = vector.shape_cast %142 : vector<2x32xbf16> to vector<2x1x32xbf16>
    tpu.vector_store %arg4[%c0_39, %c3_40, %c0_41], %145 {strides = array<i32>} : memref<2x8x32xbf16, #tpu.memory_space<vmem>>, vector<2x1x32xbf16>,
    %c0_42 = arith.constant 0 : index
    %c4 = arith.constant 4 : index
    %c0_43 = arith.constant 0 : index
    %146 = vector.load %arg2[%c0_42, %c4, %c0_43] : memref<2x8x128xbf16, #tpu.memory_space<vmem>>, vector<2x1x128xbf16>
    %147 = vector.shape_cast %146 : vector<2x1x128xbf16> to vector<2x128xbf16>
    %148 = arith.extf %147 : vector<2x128xbf16> to vector<2x128xf32>
    %149 = arith.truncf %141 : vector<2x32xf32> to vector<2x32xbf16>
    %cst_44 = arith.constant dense<0.000000e+00> : vector<2x128xf32>
    %150 = tpu.matmul %149, %3, %cst_44 {dimension_numbers = #tpu.dot_dimension_numbers<[1], [0], [0], [1], [0, 0, 1, 1], [], []>} : vector<2x32xbf16>, vector<32x128xbf16>, vector<2x128xf32> -> vector<2x128xf32>
    %151 = arith.addf %148, %150 : vector<2x128xf32>
    %152 = vector.extract_strided_slice %151 {offsets = [0, 0], sizes = [2, 32], strides = [1, 1]} : vector<2x128xf32> to vector<2x32xf32>
    %153 = arith.negf %152 : vector<2x32xf32>
    %154 = math.exp %153 : vector<2x32xf32>
    %cst_45 = arith.constant 1.000000e+00 : f32
    %155 = vector.broadcast %cst_45 : f32 to vector<2x32xf32>
    %156 = arith.addf %155, %154 : vector<2x32xf32>
    %157 = arith.divf %155, %156 : vector<2x32xf32>
    %158 = vector.extract_strided_slice %151 {offsets = [0, 32], sizes = [2, 32], strides = [1, 1]} : vector<2x128xf32> to vector<2x32xf32>
    %159 = arith.negf %158 : vector<2x32xf32>
    %160 = math.exp %159 : vector<2x32xf32>
    %cst_46 = arith.constant 1.000000e+00 : f32
    %161 = vector.broadcast %cst_46 : f32 to vector<2x32xf32>
    %162 = arith.addf %161, %160 : vector<2x32xf32>
    %163 = arith.divf %161, %162 : vector<2x32xf32>
    %164 = vector.extract_strided_slice %151 {offsets = [0, 64], sizes = [2, 32], strides = [1, 1]} : vector<2x128xf32> to vector<2x32xf32>
    %165 = math.tanh %164 : vector<2x32xf32>
    %166 = vector.extract_strided_slice %151 {offsets = [0, 96], sizes = [2, 32], strides = [1, 1]} : vector<2x128xf32> to vector<2x32xf32>
    %167 = arith.negf %166 : vector<2x32xf32>
    %168 = math.exp %167 : vector<2x32xf32>
    %cst_47 = arith.constant 1.000000e+00 : f32
    %169 = vector.broadcast %cst_47 : f32 to vector<2x32xf32>
    %170 = arith.addf %169, %168 : vector<2x32xf32>
    %171 = arith.divf %169, %170 : vector<2x32xf32>
    %172 = arith.mulf %163, %139 : vector<2x32xf32>
    %173 = arith.mulf %157, %165 : vector<2x32xf32>
    %174 = arith.addf %172, %173 : vector<2x32xf32>
    %175 = math.tanh %174 : vector<2x32xf32>
    %176 = arith.mulf %171, %175 : vector<2x32xf32>
    %177 = arith.truncf %176 : vector<2x32xf32> to vector<2x32xbf16>
    %c0_48 = arith.constant 0 : index
    %c4_49 = arith.constant 4 : index
    %c0_50 = arith.constant 0 : index
    %178 = vector.load %arg4[%c0_48, %c4_49, %c0_50] : memref<2x8x32xbf16, #tpu.memory_space<vmem>>, vector<2x1x32xbf16>
    %179 = vector.shape_cast %178 : vector<2x1x32xbf16> to vector<2x32xbf16>
    %180 = vector.shape_cast %177 : vector<2x32xbf16> to vector<2x1x32xbf16>
    tpu.vector_store %arg4[%c0_48, %c4_49, %c0_50], %180 {strides = array<i32>} : memref<2x8x32xbf16, #tpu.memory_space<vmem>>, vector<2x1x32xbf16>,
    %c0_51 = arith.constant 0 : index
    %c5 = arith.constant 5 : index
    %c0_52 = arith.constant 0 : index
    %181 = vector.load %arg2[%c0_51, %c5, %c0_52] : memref<2x8x128xbf16, #tpu.memory_space<vmem>>, vector<2x1x128xbf16>
    %182 = vector.shape_cast %181 : vector<2x1x128xbf16> to vector<2x128xbf16>
    %183 = arith.extf %182 : vector<2x128xbf16> to vector<2x128xf32>
    %184 = arith.truncf %176 : vector<2x32xf32> to vector<2x32xbf16>
    %cst_53 = arith.constant dense<0.000000e+00> : vector<2x128xf32>
    %185 = tpu.matmul %184, %3, %cst_53 {dimension_numbers = #tpu.dot_dimension_numbers<[1], [0], [0], [1], [0, 0, 1, 1], [], []>} : vector<2x32xbf16>, vector<32x128xbf16>, vector<2x128xf32> -> vector<2x128xf32>
    %186 = arith.addf %183, %185 : vector<2x128xf32>
    %187 = vector.extract_strided_slice %186 {offsets = [0, 0], sizes = [2, 32], strides = [1, 1]} : vector<2x128xf32> to vector<2x32xf32>
    %188 = arith.negf %187 : vector<2x32xf32>
    %189 = math.exp %188 : vector<2x32xf32>
    %cst_54 = arith.constant 1.000000e+00 : f32
    %190 = vector.broadcast %cst_54 : f32 to vector<2x32xf32>
    %191 = arith.addf %190, %189 : vector<2x32xf32>
    %192 = arith.divf %190, %191 : vector<2x32xf32>
    %193 = vector.extract_strided_slice %186 {offsets = [0, 32], sizes = [2, 32], strides = [1, 1]} : vector<2x128xf32> to vector<2x32xf32>
    %194 = arith.negf %193 : vector<2x32xf32>
    %195 = math.exp %194 : vector<2x32xf32>
    %cst_55 = arith.constant 1.000000e+00 : f32
    %196 = vector.broadcast %cst_55 : f32 to vector<2x32xf32>
    %197 = arith.addf %196, %195 : vector<2x32xf32>
    %198 = arith.divf %196, %197 : vector<2x32xf32>
    %199 = vector.extract_strided_slice %186 {offsets = [0, 64], sizes = [2, 32], strides = [1, 1]} : vector<2x128xf32> to vector<2x32xf32>
    %200 = math.tanh %199 : vector<2x32xf32>
    %201 = vector.extract_strided_slice %186 {offsets = [0, 96], sizes = [2, 32], strides = [1, 1]} : vector<2x128xf32> to vector<2x32xf32>
    %202 = arith.negf %201 : vector<2x32xf32>
    %203 = math.exp %202 : vector<2x32xf32>
    %cst_56 = arith.constant 1.000000e+00 : f32
    %204 = vector.broadcast %cst_56 : f32 to vector<2x32xf32>
    %205 = arith.addf %204, %203 : vector<2x32xf32>
    %206 = arith.divf %204, %205 : vector<2x32xf32>
    %207 = arith.mulf %198, %174 : vector<2x32xf32>
    %208 = arith.mulf %192, %200 : vector<2x32xf32>
    %209 = arith.addf %207, %208 : vector<2x32xf32>
    %210 = math.tanh %209 : vector<2x32xf32>
    %211 = arith.mulf %206, %210 : vector<2x32xf32>
    %212 = arith.truncf %211 : vector<2x32xf32> to vector<2x32xbf16>
    %c0_57 = arith.constant 0 : index
    %c5_58 = arith.constant 5 : index
    %c0_59 = arith.constant 0 : index
    %213 = vector.load %arg4[%c0_57, %c5_58, %c0_59] : memref<2x8x32xbf16, #tpu.memory_space<vmem>>, vector<2x1x32xbf16>
    %214 = vector.shape_cast %213 : vector<2x1x32xbf16> to vector<2x32xbf16>
    %215 = vector.shape_cast %212 : vector<2x32xbf16> to vector<2x1x32xbf16>
    tpu.vector_store %arg4[%c0_57, %c5_58, %c0_59], %215 {strides = array<i32>} : memref<2x8x32xbf16, #tpu.memory_space<vmem>>, vector<2x1x32xbf16>,
    %c0_60 = arith.constant 0 : index
    %c6 = arith.constant 6 : index
    %c0_61 = arith.constant 0 : index
    %216 = vector.load %arg2[%c0_60, %c6, %c0_61] : memref<2x8x128xbf16, #tpu.memory_space<vmem>>, vector<2x1x128xbf16>
    %217 = vector.shape_cast %216 : vector<2x1x128xbf16> to vector<2x128xbf16>
    %218 = arith.extf %217 : vector<2x128xbf16> to vector<2x128xf32>
    %219 = arith.truncf %211 : vector<2x32xf32> to vector<2x32xbf16>
    %cst_62 = arith.constant dense<0.000000e+00> : vector<2x128xf32>
    %220 = tpu.matmul %219, %3, %cst_62 {dimension_numbers = #tpu.dot_dimension_numbers<[1], [0], [0], [1], [0, 0, 1, 1], [], []>} : vector<2x32xbf16>, vector<32x128xbf16>, vector<2x128xf32> -> vector<2x128xf32>
    %221 = arith.addf %218, %220 : vector<2x128xf32>
    %222 = vector.extract_strided_slice %221 {offsets = [0, 0], sizes = [2, 32], strides = [1, 1]} : vector<2x128xf32> to vector<2x32xf32>
    %223 = arith.negf %222 : vector<2x32xf32>
    %224 = math.exp %223 : vector<2x32xf32>
    %cst_63 = arith.constant 1.000000e+00 : f32
    %225 = vector.broadcast %cst_63 : f32 to vector<2x32xf32>
    %226 = arith.addf %225, %224 : vector<2x32xf32>
    %227 = arith.divf %225, %226 : vector<2x32xf32>
    %228 = vector.extract_strided_slice %221 {offsets = [0, 32], sizes = [2, 32], strides = [1, 1]} : vector<2x128xf32> to vector<2x32xf32>
    %229 = arith.negf %228 : vector<2x32xf32>
    %230 = math.exp %229 : vector<2x32xf32>
    %cst_64 = arith.constant 1.000000e+00 : f32
    %231 = vector.broadcast %cst_64 : f32 to vector<2x32xf32>
    %232 = arith.addf %231, %230 : vector<2x32xf32>
    %233 = arith.divf %231, %232 : vector<2x32xf32>
    %234 = vector.extract_strided_slice %221 {offsets = [0, 64], sizes = [2, 32], strides = [1, 1]} : vector<2x128xf32> to vector<2x32xf32>
    %235 = math.tanh %234 : vector<2x32xf32>
    %236 = vector.extract_strided_slice %221 {offsets = [0, 96], sizes = [2, 32], strides = [1, 1]} : vector<2x128xf32> to vector<2x32xf32>
    %237 = arith.negf %236 : vector<2x32xf32>
    %238 = math.exp %237 : vector<2x32xf32>
    %cst_65 = arith.constant 1.000000e+00 : f32
    %239 = vector.broadcast %cst_65 : f32 to vector<2x32xf32>
    %240 = arith.addf %239, %238 : vector<2x32xf32>
    %241 = arith.divf %239, %240 : vector<2x32xf32>
    %242 = arith.mulf %233, %209 : vector<2x32xf32>
    %243 = arith.mulf %227, %235 : vector<2x32xf32>
    %244 = arith.addf %242, %243 : vector<2x32xf32>
    %245 = math.tanh %244 : vector<2x32xf32>
    %246 = arith.mulf %241, %245 : vector<2x32xf32>
    %247 = arith.truncf %246 : vector<2x32xf32> to vector<2x32xbf16>
    %c0_66 = arith.constant 0 : index
    %c6_67 = arith.constant 6 : index
    %c0_68 = arith.constant 0 : index
    %248 = vector.load %arg4[%c0_66, %c6_67, %c0_68] : memref<2x8x32xbf16, #tpu.memory_space<vmem>>, vector<2x1x32xbf16>
    %249 = vector.shape_cast %248 : vector<2x1x32xbf16> to vector<2x32xbf16>
    %250 = vector.shape_cast %247 : vector<2x32xbf16> to vector<2x1x32xbf16>
    tpu.vector_store %arg4[%c0_66, %c6_67, %c0_68], %250 {strides = array<i32>} : memref<2x8x32xbf16, #tpu.memory_space<vmem>>, vector<2x1x32xbf16>,
    %c0_69 = arith.constant 0 : index
    %c7 = arith.constant 7 : index
    %c0_70 = arith.constant 0 : index
    %251 = vector.load %arg2[%c0_69, %c7, %c0_70] : memref<2x8x128xbf16, #tpu.memory_space<vmem>>, vector<2x1x128xbf16>
    %252 = vector.shape_cast %251 : vector<2x1x128xbf16> to vector<2x128xbf16>
    %253 = arith.extf %252 : vector<2x128xbf16> to vector<2x128xf32>
    %254 = arith.truncf %246 : vector<2x32xf32> to vector<2x32xbf16>
    %cst_71 = arith.constant dense<0.000000e+00> : vector<2x128xf32>
    %255 = tpu.matmul %254, %3, %cst_71 {dimension_numbers = #tpu.dot_dimension_numbers<[1], [0], [0], [1], [0, 0, 1, 1], [], []>} : vector<2x32xbf16>, vector<32x128xbf16>, vector<2x128xf32> -> vector<2x128xf32>
    %256 = arith.addf %253, %255 : vector<2x128xf32>
    %257 = vector.extract_strided_slice %256 {offsets = [0, 0], sizes = [2, 32], strides = [1, 1]} : vector<2x128xf32> to vector<2x32xf32>
    %258 = arith.negf %257 : vector<2x32xf32>
    %259 = math.exp %258 : vector<2x32xf32>
    %cst_72 = arith.constant 1.000000e+00 : f32
    %260 = vector.broadcast %cst_72 : f32 to vector<2x32xf32>
    %261 = arith.addf %260, %259 : vector<2x32xf32>
    %262 = arith.divf %260, %261 : vector<2x32xf32>
    %263 = vector.extract_strided_slice %256 {offsets = [0, 32], sizes = [2, 32], strides = [1, 1]} : vector<2x128xf32> to vector<2x32xf32>
    %264 = arith.negf %263 : vector<2x32xf32>
    %265 = math.exp %264 : vector<2x32xf32>
    %cst_73 = arith.constant 1.000000e+00 : f32
    %266 = vector.broadcast %cst_73 : f32 to vector<2x32xf32>
    %267 = arith.addf %266, %265 : vector<2x32xf32>
    %268 = arith.divf %266, %267 : vector<2x32xf32>
    %269 = vector.extract_strided_slice %256 {offsets = [0, 64], sizes = [2, 32], strides = [1, 1]} : vector<2x128xf32> to vector<2x32xf32>
    %270 = math.tanh %269 : vector<2x32xf32>
    %271 = vector.extract_strided_slice %256 {offsets = [0, 96], sizes = [2, 32], strides = [1, 1]} : vector<2x128xf32> to vector<2x32xf32>
    %272 = arith.negf %271 : vector<2x32xf32>
    %273 = math.exp %272 : vector<2x32xf32>
    %cst_74 = arith.constant 1.000000e+00 : f32
    %274 = vector.broadcast %cst_74 : f32 to vector<2x32xf32>
    %275 = arith.addf %274, %273 : vector<2x32xf32>
    %276 = arith.divf %274, %275 : vector<2x32xf32>
    %277 = arith.mulf %268, %244 : vector<2x32xf32>
    %278 = arith.mulf %262, %270 : vector<2x32xf32>
    %279 = arith.addf %277, %278 : vector<2x32xf32>
    %280 = math.tanh %279 : vector<2x32xf32>
    %281 = arith.mulf %276, %280 : vector<2x32xf32>
    %282 = arith.truncf %281 : vector<2x32xf32> to vector<2x32xbf16>
    %c0_75 = arith.constant 0 : index
    %c7_76 = arith.constant 7 : index
    %c0_77 = arith.constant 0 : index
    %283 = vector.load %arg4[%c0_75, %c7_76, %c0_77] : memref<2x8x32xbf16, #tpu.memory_space<vmem>>, vector<2x1x32xbf16>
    %284 = vector.shape_cast %283 : vector<2x1x32xbf16> to vector<2x32xbf16>
    %285 = vector.shape_cast %282 : vector<2x32xbf16> to vector<2x1x32xbf16>
    tpu.vector_store %arg4[%c0_75, %c7_76, %c0_77], %285 {strides = array<i32>} : memref<2x8x32xbf16, #tpu.memory_space<vmem>>, vector<2x1x32xbf16>,
    %c0_78 = arith.constant 0 : index
    %c0_79 = arith.constant 0 : index
    %286 = vector.load %arg5[%c0_78, %c0_79] : memref<2x32xf32, #tpu.memory_space<vmem>>, vector<2x32xf32>
    tpu.vector_store %arg5[%c0_78, %c0_79], %281 {strides = array<i32>} : memref<2x32xf32, #tpu.memory_space<vmem>>, vector<2x32xf32>,
    %c0_80 = arith.constant 0 : index
    %c0_81 = arith.constant 0 : index
    %287 = vector.load %arg6[%c0_80, %c0_81] : memref<2x32xf32, #tpu.memory_space<vmem>>, vector<2x32xf32>
    tpu.vector_store %arg6[%c0_80, %c0_81], %279 {strides = array<i32>} : memref<2x32xf32, #tpu.memory_space<vmem>>, vector<2x32xf32>,
    return
  }
  func.func @transform_0(%arg0: i32, %arg1: i32) -> (i32, i32, i32) {
    %c0_i32 = arith.constant 0 : i32
    %c0_i32_0 = arith.constant 0 : i32
    return %arg0, %arg1, %c0_i32 : i32, i32, i32
  }
  func.func @transform_2(%arg0: i32, %arg1: i32) -> (i32, i32, i32) {
    %c0_i32 = arith.constant 0 : i32
    %c0_i32_0 = arith.constant 0 : i32
    return %arg0, %arg1, %c0_i32 : i32, i32, i32
  }
  func.func @transform_3(%arg0: i32, %arg1: i32) -> (i32, i32) {
    %c0_i32 = arith.constant 0 : i32
    %c0_i32_0 = arith.constant 0 : i32
    return %arg0, %c0_i32 : i32, i32
  }
  func.func @transform_4(%arg0: i32, %arg1: i32) -> (i32, i32) {
    %c0_i32 = arith.constant 0 : i32
    %c0_i32_0 = arith.constant 0 : i32
    return %arg0, %c0_i32 : i32, i32
  }
}

module attributes {stable_mosaic.version = 11 : i64} {
  func.func @_matmul_bias_inplace_kernel(%arg0: i32, %arg1: i32, %arg2: i32, %arg3: memref<16x128xbf16, #tpu.memory_space<vmem>>, %arg4: memref<128x128xbf16, #tpu.memory_space<vmem>>, %arg5: memref<1x128xf32, #tpu.memory_space<vmem>>, %arg6: memref<16x128xf32, #tpu.memory_space<vmem>>) attributes {dimension_semantics = [#tpu.dimension_semantics<parallel>, #tpu.dimension_semantics<parallel>, #tpu.dimension_semantics<arbitrary>], iteration_bounds = array<i64: 1, 1, 1>, scalar_prefetch = 0 : i64, scratch_operands = 0 : i64, tpu.core_type = #tpu.core_type<tc>, window_params = [{transform_indices = @transform_0, window_bounds = array<i64: 16, 128>}, {transform_indices = @transform_1, window_bounds = array<i64: 128, 128>}, {transform_indices = @transform_2, window_bounds = array<i64: 1, 128>}, {transform_indices = @transform_3, window_bounds = array<i64: 16, 128>}]} {
    %c0_i32 = arith.constant 0 : i32
    %0 = arith.cmpi eq, %arg2, %c0_i32 : i32
    %1 = arith.extui %0 : i1 to i32
    %c0_i32_0 = arith.constant 0 : i32
    %2 = arith.cmpi ne, %1, %c0_i32_0 : i32
    scf.if %2 {
      %cst_10 = arith.constant 0.000000e+00 : f32
      %12 = vector.broadcast %cst_10 : f32 to vector<16x128xf32>
      %c0_11 = arith.constant 0 : index
      %c0_12 = arith.constant 0 : index
      %13 = vector.load %arg6[%c0_11, %c0_12] : memref<16x128xf32, #tpu.memory_space<vmem>>, vector<16x128xf32>
      tpu.vector_store %arg6[%c0_11, %c0_12], %12 {strides = array<i32>} : memref<16x128xf32, #tpu.memory_space<vmem>>, vector<16x128xf32>,
    } else {
    }
    %c0 = arith.constant 0 : index
    %c0_1 = arith.constant 0 : index
    %3 = vector.load %arg6[%c0, %c0_1] : memref<16x128xf32, #tpu.memory_space<vmem>>, vector<16x128xf32>
    %c0_2 = arith.constant 0 : index
    %c0_3 = arith.constant 0 : index
    %4 = vector.load %arg3[%c0_2, %c0_3] : memref<16x128xbf16, #tpu.memory_space<vmem>>, vector<16x128xbf16>
    %c0_4 = arith.constant 0 : index
    %c0_5 = arith.constant 0 : index
    %5 = vector.load %arg4[%c0_4, %c0_5] : memref<128x128xbf16, #tpu.memory_space<vmem>>, vector<128x128xbf16>
    %cst = arith.constant dense<0.000000e+00> : vector<16x128xf32>
    %6 = tpu.matmul %4, %5, %cst {dimension_numbers = #tpu.dot_dimension_numbers<[1], [0], [0], [1], [0, 0, 1, 1], [], []>} : vector<16x128xbf16>, vector<128x128xbf16>, vector<16x128xf32> -> vector<16x128xf32>
    %7 = arith.addf %3, %6 : vector<16x128xf32>
    %c0_6 = arith.constant 0 : index
    %c0_7 = arith.constant 0 : index
    %8 = vector.load %arg6[%c0_6, %c0_7] : memref<16x128xf32, #tpu.memory_space<vmem>>, vector<16x128xf32>
    tpu.vector_store %arg6[%c0_6, %c0_7], %7 {strides = array<i32>} : memref<16x128xf32, #tpu.memory_space<vmem>>, vector<16x128xf32>,
    %c0_i32_8 = arith.constant 0 : i32
    %9 = arith.cmpi eq, %arg2, %c0_i32_8 : i32
    %10 = arith.extui %9 : i1 to i32
    %c0_i32_9 = arith.constant 0 : i32
    %11 = arith.cmpi ne, %10, %c0_i32_9 : i32
    scf.if %11 {
      %c0_10 = arith.constant 0 : index
      %c0_11 = arith.constant 0 : index
      %12 = vector.load %arg6[%c0_10, %c0_11] : memref<16x128xf32, #tpu.memory_space<vmem>>, vector<16x128xf32>
      %c0_12 = arith.constant 0 : index
      %c0_13 = arith.constant 0 : index
      %13 = vector.load %arg5[%c0_12, %c0_13] : memref<1x128xf32, #tpu.memory_space<vmem>>, vector<1x128xf32>
      %14 = vector.broadcast %13 : vector<1x128xf32> to vector<16x128xf32>
      %15 = arith.addf %12, %14 : vector<16x128xf32>
      %c0_14 = arith.constant 0 : index
      %c0_15 = arith.constant 0 : index
      %16 = vector.load %arg6[%c0_14, %c0_15] : memref<16x128xf32, #tpu.memory_space<vmem>>, vector<16x128xf32>
      tpu.vector_store %arg6[%c0_14, %c0_15], %15 {strides = array<i32>} : memref<16x128xf32, #tpu.memory_space<vmem>>, vector<16x128xf32>,
    } else {
    }
    return
  }
  func.func @transform_0(%arg0: i32, %arg1: i32, %arg2: i32) -> (i32, i32) {
    %c0_i32 = arith.constant 0 : i32
    return %arg0, %arg2 : i32, i32
  }
  func.func @transform_1(%arg0: i32, %arg1: i32, %arg2: i32) -> (i32, i32) {
    %c0_i32 = arith.constant 0 : i32
    return %arg2, %arg1 : i32, i32
  }
  func.func @transform_2(%arg0: i32, %arg1: i32, %arg2: i32) -> (i32, i32) {
    %c0_i32 = arith.constant 0 : i32
    %c0_i32_0 = arith.constant 0 : i32
    return %c0_i32, %arg1 : i32, i32
  }
  func.func @transform_3(%arg0: i32, %arg1: i32, %arg2: i32) -> (i32, i32) {
    %c0_i32 = arith.constant 0 : i32
    return %arg0, %arg1 : i32, i32
  }
}

</mosaic_0001>

<bundles_post_ra>
// kernel: lstm_model_forward.5
= control target key start
LH: loop header
LB: loop body
LE: loop exit
PB: predicated region body
PF: predicated region fallthrough
CT: control target
= control target key end

     0   :  { %v227_v0 = vmov 0.0   ;;  %vm228_vm0 = vmmov 0   ;;  %s282_s1 = inlined_call_operand.vmem [shape: bf16[128,128], index: 1, kind: input, shape index: {}]   ;;  %s283_s0 = inlined_call_operand.vmem [shape: bf16[16,128], index: 0, kind: input, shape index: {}]   ;;  %s284_s2 = inlined_call_operand.vmem [shape: f32[1,128], index: 2, kind: input, shape index: {}]   ;;  %s285_s3 = inlined_call_operand.vmem [shape: bf16[16,128], index: 3, kind: output, shape index: {}]  }
   0x1   :  { %196 = vmatprep.subr.bf16.mxu0 %v227_v0  ;;  %v218_v1 = vld [vmem:[%s282_s1] sm:$0xff]   ;;  %212 = vmatprep.mubr.msk.bf16.mxu0 %vm228_vm0, %v227_v0  ;;  %v219_v2 = vld [vmem:[%s282_s1 + $0x8] sm:$0xff]   ;;  %v220_v3 = vld [vmem:[%s282_s1 + $0x10] sm:$0xff]  }
   0x2   :  { %197 = vmatpush3.bf16.msra.mxu0 %v218_v1  ;;  %v221_v4 = vld [vmem:[%s282_s1 + $0x18] sm:$0xff]   ;;  %v222_v5 = vld [vmem:[%s282_s1 + $0x20] sm:$0xff]   ;;  %v223_v6 = vld [vmem:[%s282_s1 + $0x28] sm:$0xff]  }
   0x3   :  { %198 = vmatprep.subr.bf16.mxu0 %v227_v0  ;;  %v224_v7 = vld [vmem:[%s282_s1 + $0x30] sm:$0xff]   ;;  %v225_v8 = vld [vmem:[%s282_s1 + $0x38] sm:$0xff]   ;;  %v226_v9 = vld [vmem:[%s283_s0] sm:$0xff]  }
   0x4   :  { %v177_v11 = vld [vmem:[%s284_s2] ss:$0 sm:$0xff] }
   0x6   :  { %199 = vmatpush3.bf16.msra.mxu0 %v219_v2 }
   0x7   :  { %200 = vmatprep.subr.bf16.mxu0 %v227_v0 }
   0xa   :  { %201 = vmatpush3.bf16.msra.mxu0 %v220_v3 }
   0xb   :  { %202 = vmatprep.subr.bf16.mxu0 %v227_v0 }
   0xe   :  { %203 = vmatpush3.bf16.msra.mxu0 %v221_v4 }
   0xf   :  { %204 = vmatprep.subr.bf16.mxu0 %v227_v0 }
  0x12   :  { %205 = vmatpush3.bf16.msra.mxu0 %v222_v5 }
  0x13   :  { %206 = vmatprep.subr.bf16.mxu0 %v227_v0 }
  0x16   :  { %207 = vmatpush3.bf16.msra.mxu0 %v223_v6 }
  0x17   :  { %208 = vmatprep.subr.bf16.mxu0 %v227_v0 }
  0x1a   :  { %209 = vmatpush3.bf16.msra.mxu0 %v224_v7 }
  0x1b   :  { %210 = vmatprep.subr.bf16.mxu0 %v227_v0 }
  0x1e   :  { %211 = vmatpush3.bf16.msra.mxu0 %v225_v8 }
  0x21   :  { %213 = vmatmul.mubr.bf16.vlgmr.msra.gmra.mrb[0].mxu0 %v226_v9 }
  0xf4   :  { %v129_v10 = vpop.f32.mrb[0].mxu0 }
  0xf5   :  { %v214_v12 = vpop.f32.mrb[1].mxu0  ;;  %v152_v14 = vadd.f32 %v177_v11, %v129_v10 }
  0xf6   :  { %v132_v13 = vpop.f32.mrb[2].mxu0 }
  0xf7   :  { %v153_v15 = vadd.f32 %v177_v11, %v132_v13  ;;  %v215_v16 = vpop.f32.mrb[3].mxu0 }
  0xf9   :  { %v185_v17 = vpack.c.bf16 %v153_v15, %v152_v14 }
  0xfb   :  { %186 = vst [vmem:[%s285_s3] sm:$0xff] %v185_v17  }

// kernel: lstm_model_forward.9
= control target key start
LH: loop header
LB: loop body
LE: loop exit
PB: predicated region body
PF: predicated region fallthrough
CT: control target
= control target key end

     0   :  { %v250_v1 = vmov 0.0   ;;  %vm251_vm0 = vmmov 0   ;;  %s317_s0 = inlined_call_operand.vmem [shape: bf16[16,128], index: 0, kind: input, shape index: {}]   ;;  %s318_s1 = inlined_call_operand.vmem [shape: bf16[128,128], index: 1, kind: input, shape index: {}]   ;;  %s319_s2 = inlined_call_operand.vmem [shape: f32[1,128], index: 2, kind: input, shape index: {}]   ;;  %s320_s3 = inlined_call_operand.hbm [shape: f32[16,128], index: 3, kind: output, shape index: {}]  }
   0x1   :  { %v217_v0 = vld [vmem:[%s318_s1] sm:$0xff]   ;;  %192 = vmatprep.subr.bf16.mxu0 %v250_v1  ;;  %v218_v2 = vld [vmem:[%s318_s1 + $0x8] sm:$0xff]   ;;  %208 = vmatprep.mubr.msk.bf16.mxu0 %vm251_vm0, %v250_v1  ;;  %v219_v3 = vld [vmem:[%s318_s1 + $0x10] sm:$0xff]  }
   0x2   :  { %193 = vmatpush3.bf16.msra.mxu0 %v217_v0 }
   0x3   :  { %194 = vmatprep.subr.bf16.mxu0 %v250_v1 }
   0x6   :  { %195 = vmatpush3.bf16.msra.mxu0 %v218_v2 }
   0x7   :  { %196 = vmatprep.subr.bf16.mxu0 %v250_v1 }
   0x8   :  { %8 = vsyncpa [#allocation3], 0  ;;  %v220_v4 = vld [vmem:[%s318_s1 + $0x18] sm:$0xff]   ;;  %v221_v5 = vld [vmem:[%s318_s1 + $0x20] sm:$0xff]   ;;  %s252_s5 = smov [#allocation2]  }
   0x9   :  { %v222_v6 = vld [vmem:[%s318_s1 + $0x28] sm:$0xff]   ;;  %v223_v7 = vld [vmem:[%s318_s1 + $0x30] sm:$0xff]   ;;  %v224_v8 = vld [vmem:[%s318_s1 + $0x38] sm:$0xff]   ;;  %s162_s6 = sshll.u32 %s252_s5, 4  ;;  %s163_s6 = int_to_ptr.vmem [resolvable:$true] %s162_s6 }
   0xa   :  { %197 = vmatpush3.bf16.msra.mxu0 %v219_v3  ;;  %v225_v9 = vld [vmem:[%s317_s0] sm:$0xff]   ;;  %s226_s1 = scalar_lea.vmem %s163_s6, 256  ;;  %p231_p1 = scmp.lt.s32.totalorder %s163_s6, %s163_s6 }
   0xb   :  { %198 = vmatprep.subr.bf16.mxu0 %v250_v1  ;;  %v182_v11 = vld [vmem:[%s319_s2] ss:$0 sm:$0xff]  ;;  %p227_p0 = scmp.ne.s32.totalorder %s163_s6, %s226_s1  ;;  %p232_p2 = scmp.lt.s32.totalorder %s226_s1, %s226_s1 }
   0xd   :  { %p233_p3 = por %p232_p2, %p231_p1 }
   0xe   :  { %199 = vmatpush3.bf16.msra.mxu0 %v220_v4 }
   0xf   :  { %200 = vmatprep.subr.bf16.mxu0 %v250_v1  ;;  %p234_p4 = pnand %p233_p3, %p227_p0 }
  0x12   :  { %201 = vmatpush3.bf16.msra.mxu0 %v221_v5 }
  0x13   :  { %202 = vmatprep.subr.bf16.mxu0 %v250_v1 }
  0x16   :  { %203 = vmatpush3.bf16.msra.mxu0 %v222_v6 }
  0x17   :  { %204 = vmatprep.subr.bf16.mxu0 %v250_v1 }
  0x1a   :  { %205 = vmatpush3.bf16.msra.mxu0 %v223_v7 }
  0x1b   :  { %206 = vmatprep.subr.bf16.mxu0 %v250_v1 }
  0x1e   :  { %207 = vmatpush3.bf16.msra.mxu0 %v224_v8 }
  0x21   :  { %209 = vmatmul.mubr.bf16.vlgmr.msra.gmra.mrb[0].mxu0 %v225_v9 }
  0xf4   :  { %v130_v10 = vpop.f32.mrb[0].mxu0 }
  0xf5   :  { %v210_v12 = vpop.f32.mrb[1].mxu0  ;;  %v153_v14 = vadd.f32 %v182_v11, %v130_v10 }
  0xf6   :  { %v133_v13 = vpop.f32.mrb[2].mxu0 }
  0xf7   :  { %v211_v15 = vpop.f32.mrb[3].mxu0  ;;  %155 = vst [vmem:[#allocation2] sm:$0xff] %v153_v14  ;;  %v154_v16 = vadd.f32 %v182_v11, %v133_v13 }
  0xf9   :  { %156 = vst [vmem:[#allocation2 + $0x8] sm:$0xff] %v154_v16 }
  0xfa   :  { %237 = shalt.err (!%p234_p4)
}
  0xfb   :  { %s238_s2 = scalar_lea.hbm %s320_s3, 256 }
  0xfc   :  { %p239_p5 = scmp.ne.s32.totalorder %s320_s3, %s238_s2  ;;  %p242_p6 = scmp.lt.u32.totalorder %s238_s2, %s320_s3 }
  0xfe   :  { %p244_p7 = pnand %p242_p6, %p239_p5 }
 0x100   :  { %247 = shalt.err (!%p244_p7)
}
 0x101   :  { %s253_s12 = smov 128   ;;  %s254_s13 = smov 8  }
 0x102   :  { %168 = dma.vmem_to_hbm [thread:$0]  %s163_s6, 256, %s320_s3, [#allocation3], %s253_s12, %s253_s12, %s254_s13  }
 0x103   :  { %248 = dma.done.wait [#allocation3], 256  }
 0x104   :  { %249 = vsyncadd [#allocation3], 4294967040 }
 0x105   :  { %172 = vsyncpa [#allocation3], 1 }

// kernel: lstm_model_forward.6
= control target key start
LH: loop header
LB: loop body
LE: loop exit
PB: predicated region body
PF: predicated region fallthrough
CT: control target
= control target key end

     0   :  { %s1966_s0 = inlined_call_operand.vmem [shape: bf16[2,8,128], index: 0, kind: input, shape index: {}]   ;;  %s1967_s1 = inlined_call_operand.vmem [shape: bf16[32,128], index: 1, kind: input, shape index: {}]   ;;  %s1968_s2 = inlined_call_operand.vmem [shape: bf16[2,8,32], index: 2, kind: output, shape index: {0}]   ;;  %s1969_s3 = inlined_call_operand.vmem [shape: f32[2,32], index: 3, kind: output, shape index: {1}]   ;;  %s1970_s4 = inlined_call_operand.vmem [shape: f32[2,32], index: 4, kind: output, shape index: {2}]  }
   0x1   :  { %v1515_v0 = vld [vmem:[%s1967_s1] sm:$0xff]  ;;  %v1520_v1 = vld [vmem:[%s1967_s1 + $0x8] sm:$0xff] }
   0x2   :  { %60 = vsyncadd [#allocation3], 256 }
   0x3   :  { %1480 = dma.done.wait [#allocation3], 256 }
   0x4   :  { %1481 = vsyncadd [#allocation3], 4294967040  ;;  %vm65_vm0 = vcmask 254976   ;;  %v1482_v2 = vmov 0.0   ;;  %vm1483_vm1 = vmmov 0   ;;  %vm77_vm2 = vcmask 261120  }
   0x5   :  { %1283 = vmatprep.subr.bf16.mxu0 %v1482_v2  ;;  %1287 = vmatprep.mubr.msk.bf16.mxu0 %vm1483_vm1, %v1482_v2  ;;  %66 = vst.msk [vmem:[%s1969_s3] sm:$0x3] %vm65_vm0, %v1482_v2  ;;  %67 = vst.msk [vmem:[%s1970_s4] sm:$0x3] %vm65_vm0, %v1482_v2  ;;  %s1484_s26 = smov 32   ;;  %s1485_s5 = smov 64  }
   0x6   :  { %1284 = vmatpush3.bf16.msra.mxu0 %v1515_v0  ;;  %1291 = vmatprep.subr.bf16.mxu1 %v1482_v2  ;;  %v73_v7 = vld [vmem:[%s1966_s0 + $0x4] sm:$0x1]  ;;  %v72_v8 = vld [vmem:[%s1966_s0] sm:$0x1]  ;;  %vm211_vm3 = vcmask 1041409   ;;  %vm197_vm4 = vcmask 253952  }
   0x7   :  { %1285 = vmatprep.subr.bf16.mxu0 %v1482_v2  ;;  %1292 = vmatpush3.bf16.msra.mxu1 %v1515_v0  ;;  %v75_v9 = vunpack.c.l.bf16 %v73_v7  ;;  %v74_v13 = vunpack.c.l.bf16 %v72_v8  ;;  %v207_v54 = vld [vmem:[%s1966_s0 + $0x4] sm:$0x1]  ;;  %v206_v55 = vld [vmem:[%s1966_s0] sm:$0x1]  ;;  %vm198_vm5 = vsmask.f32 256 }
   0x8   :  { %1293 = vmatprep.subr.bf16.mxu1 %v1482_v2  ;;  %1295 = vmatprep.mubr.msk.bf16.mxu1 %vm1483_vm1, %v1482_v2  ;;  %v209_v56 = vunpack.c.l.bf16 %v207_v54  ;;  %v208_v57 = vunpack.c.l.bf16 %v206_v55  ;;  %vm1818_vm6 = vmand %vm197_vm4, %vm198_vm5  ;;  %vm468_vm7 = vcmask 254977   ;;  %vm469_vm8 = vsmask.f32 1280  ;;  %s1486_s24 = smov 96  }
   0x9   :  { %vm1838_vm9 = vmand %vm468_vm7, %vm469_vm8  ;;  %vm741_vm10 = vcmask 256002   ;;  %vm742_vm11 = vsmask.f32 2304  ;;  %vm1014_vm13 = vcmask 257027   ;;  %vm1015_vm14 = vsmask.f32 3328 }
   0xa   :  { %1286 = vmatpush3.bf16.msra.mxu0 %v1520_v1  ;;  %vm1861_vm12 = vmand %vm741_vm10, %vm742_vm11  ;;  %vm333_vm0 = vsmask.f32 7938  ;;  %vm878_vm5 = vsmask.f32 7946  ;;  %vm1151_vm8 = vsmask.f32 7950 }
   0xb   :  { %1294 = vmatpush3.bf16.msra.mxu1 %v1520_v1  ;;  %1299 = vmatprep.subr.bf16.mxu0 %v1482_v2  ;;  %vm1016_vm15 = vmand %vm1014_vm13, %vm1015_vm14 }
   0xc   :  { %v70_v3 = vld [vmem:[%s1969_s3] sm:$0x3]  ;;  %1307 = vmatprep.subr.bf16.mxu1 %v1482_v2 }
   0xd   :  { %v71_v4 = vld [vmem:[%s1970_s4] sm:$0x3]  ;;  %v76_v5 = vpack.c.bf16 %v70_v3, %v70_v3 }
   0xe   :  { %v142_v6 = vrot.slane %v71_v4, 1 }
   0xf   :  { %1288 = vmatmul.mubr.msk.bf16.vlgmr.msra.gmra.mrb[0].mxu0 %vm77_vm2, %v76_v5 }
  0x10   :  { %145 = vrot.lane.b32.xlu1 %v142_v6, %s1484_s26  ;;  %1300 = vmatpush3.bf16.msra.mxu0 %v1515_v0 }
  0x11   :  { %1303 = vmatprep.mubr.msk.bf16.mxu0 %vm1483_vm1, %v1482_v2  ;;  %1301 = vmatprep.subr.bf16.mxu0 %v1482_v2 }
  0x14   :  { %143 = vrot.lane.b32.xlu1 %v71_v4, %s1484_s26  ;;  %1302 = vmatpush3.bf16.msra.mxu0 %v1520_v1 }
  0x15   :  { %1315 = vmatprep.subr.bf16.mxu0 %v1482_v2 }
  0x82   :  { %v146_v32 = vpop.permute.xlu1 %145 }
  0x86   :  { %v144_v34 = vpop.permute.xlu1 %143 }
  0xe2   :  { %v115_v10 = vpop.f32.mrb[0].mxu0 }
  0xe3   :  { %v122_v11 = vrot.slane %v115_v10, 1  ;;  %v1289_v12 = vpop.f32.mrb[1].mxu0  ;;  %v125_v17 = vadd.f32 %v115_v10, %v74_v13 }
  0xe4   :  { %v118_v14 = vpop.f32.mrb[2].mxu0 }
  0xe5   :  { %v126_v15 = vadd.f32 %v122_v11, %v75_v9  ;;  %v1290_v16 = vpop.f32.mrb[3].mxu0  ;;  %v1204_v21 = vmul.f32 -1.442695, %v125_v17 }
  0xe7   :  { %1352 = vtanh.f32 %v126_v15  ;;  %v1205_v20 = vmul.f32 -1.442695, %v126_v15 }
  0xe8   :  { %1354 = vtanh.f32 %v125_v17 }
  0xe9   :  { %1356 = vpow2.f32 %v1205_v20 }
  0xea   :  { %1358 = vpow2.f32 %v1204_v21 }
  0xf1   :  { %v1353_v18 = vpop.eup %1352 }
  0xf2   :  { %155 = vrot.lane.b32.xlu0 %v1353_v18, %s1485_s5  ;;  %v1355_v19 = vpop.eup %1354 }
  0xf3   :  { %v1357_v22 = vpop.eup %1356 }
  0xf4   :  { %v134_v23 = vadd.f32 1.0, %v1357_v22  ;;  %v1359_v24 = vpop.eup %1358 }
  0xf5   :  { %v133_v25 = vadd.f32 1.0, %v1359_v24 }
  0xf6   :  { %153 = vrot.lane.b32.xlu0 %v1355_v19, %s1485_s5  ;;  %1360 = vrcp.f32 %v134_v23 }
  0xf7   :  { %1362 = vrcp.f32 %v133_v25 }
 0x100   :  { %v1361_v26 = vpop.eup %1360 }
 0x101   :  { %v1363_v29 = vpop.eup %1362  ;;  %v150_v33 = vmul.f32 %v1361_v26, %v146_v32 }
 0x102   :  { %v149_v37 = vmul.f32 %v1363_v29, %v144_v34 }
 0x164   :  { %v156_v27 = vpop.permute.xlu0 %155 }
 0x165   :  { %v160_v28 = vmul.f32 %v1361_v26, %v156_v27 }
 0x167   :  { %165 = vrot.lane.b32.xlu0 %v160_v28, %s1484_s26 }
 0x168   :  { %v154_v30 = vpop.permute.xlu0 %153 }
 0x169   :  { %v159_v31 = vmul.f32 %v1363_v29, %v154_v30 }
 0x16b   :  { %163 = vrot.lane.b32.xlu1 %v159_v31, %s1484_s26 }
 0x1d9   :  { %v166_v35 = vpop.permute.xlu0 %165 }
 0x1da   :  { %v1569_v36 = vadd.f32 %v166_v35, %v150_v33 }
 0x1dc   :  { %1364 = vtanh.f32 %v1569_v36  ;;  %v282_v18 = vrot.slane %v1569_v36, 7 }
 0x1dd   :  { %v164_v38 = vpop.permute.xlu1 %163 }
 0x1de   :  { %v1572_v39 = vadd.f32 %v164_v38, %v149_v37 }
 0x1e0   :  { %1366 = vtanh.f32 %v1572_v39  ;;  %v281_v20 = vrot.slane %v1572_v39, 7 }
 0x1e6   :  { %v1365_v40 = vpop.eup %1364 }
 0x1e7   :  { %177 = vrot.lane.b32.xlu0 %v1365_v40, %s1485_s5  ;;  %v341_v40 = vld [vmem:[%s1966_s0] sm:$0x2] }
 0x1ea   :  { %v1367_v41 = vpop.eup %1366 }
 0x1eb   :  { %175 = vrot.lane.b32.xlu1 %v1367_v41, %s1485_s5  ;;  %v342_v41 = vld [vmem:[%s1966_s0 + $0x4] sm:$0x2] }
 0x259   :  { %v178_v42 = vpop.permute.xlu0 %177 }
 0x25a   :  { %v182_v43 = vmul.f32 %v1361_v26, %v178_v42  ;;  %v343_v42 = vunpack.c.l.bf16 %v341_v40 }
 0x25c   :  { %v1577_v44 = vpack.c.bf16 %v182_v43, %v182_v43  ;;  %v344_v43 = vunpack.c.l.bf16 %v342_v41 }
 0x25d   :  { %v176_v45 = vpop.permute.xlu1 %175 }
 0x25e   :  { %v188_v46 = vunpack.c.l.b16 %v1577_v44  ;;  %v181_v47 = vmul.f32 %v1363_v29, %v176_v45 }
 0x260   :  { %v1580_v48 = vpack.c.bf16 %v181_v47, %v181_v47  ;;  %v210_v49 = vrot.slane %v188_v46, 7 }
 0x262   :  { %v187_v50 = vunpack.c.l.b16 %v1580_v48 }
 0x264   :  { %v212_v51 = vsel %vm211_vm3, %v210_v49, %v187_v50 }
 0x265   :  { %v213_v52 = vpack.c.b16 %v212_v51, %v212_v51 }
 0x267   :  { %214 = vrot.lane.b32.xlu0 %v213_v52, %s1484_s26 }
 0x2d9   :  { %v215_v53 = vpop.permute.xlu0 %214 }
 0x2da   :  { %1296 = vmatmul.mubr.msk.bf16.vlgmr.msra.gmra.mrb[0].mxu1 %vm77_vm2, %v215_v53 }
 0x2db   :  { %1308 = vmatpush3.bf16.msra.mxu1 %v1515_v0  ;;  %1311 = vmatprep.mubr.msk.bf16.mxu1 %vm1483_vm1, %v1482_v2 }
 0x2dc   :  { %1309 = vmatprep.subr.bf16.mxu1 %v1482_v2 }
 0x2df   :  { %1310 = vmatpush3.bf16.msra.mxu1 %v1520_v1 }
 0x2e0   :  { %1323 = vmatprep.subr.bf16.mxu1 %v1482_v2 }
 0x3ad   :  { %v253_v58 = vpop.f32.mrb[0].mxu1 }
 0x3ae   :  { %v260_v59 = vrot.slane %v253_v58, 7  ;;  %v264_v60 = vadd.f32 %v253_v58, %v209_v56  ;;  %v1297_v61 = vpop.f32.mrb[1].mxu1 }
 0x3af   :  { %v256_v62 = vpop.f32.mrb[2].mxu1 }
 0x3b0   :  { %v263_v63 = vadd.f32 %v260_v59, %v208_v57  ;;  %1368 = vtanh.f32 %v264_v60  ;;  %v1298_v3 = vpop.f32.mrb[3].mxu1  ;;  %v1210_v6 = vmul.f32 -1.442695, %v264_v60 }
 0x3b2   :  { %1370 = vtanh.f32 %v263_v63  ;;  %v1209_v7 = vmul.f32 -1.442695, %v263_v63 }
 0x3b3   :  { %1372 = vpow2.f32 %v1210_v6 }
 0x3b4   :  { %1374 = vpow2.f32 %v1209_v7 }
 0x3ba   :  { %v1369_v4 = vpop.eup %1368 }
 0x3bb   :  { %291 = vrot.lane.b32.xlu0 %v1369_v4, %s1485_s5 }
 0x3bc   :  { %v1371_v5 = vpop.eup %1370 }
 0x3bd   :  { %289 = vrot.lane.b32.xlu1 %v1371_v5, %s1485_s5  ;;  %v1373_v8 = vpop.eup %1372 }
 0x3be   :  { %v1375_v9 = vpop.eup %1374  ;;  %v272_v10 = vadd.f32 1.0, %v1373_v8 }
 0x3bf   :  { %v271_v11 = vadd.f32 1.0, %v1375_v9 }
 0x3c0   :  { %1376 = vrcp.f32 %v272_v10 }
 0x3c1   :  { %1378 = vrcp.f32 %v271_v11 }
 0x3ca   :  { %v1377_v12 = vpop.eup %1376 }
 0x3cb   :  { %v1379_v15 = vpop.eup %1378  ;;  %v286_v19 = vmul.f32 %v1377_v12, %v282_v18 }
 0x3cc   :  { %v285_v23 = vmul.f32 %v1379_v15, %v281_v20 }
 0x42d   :  { %v292_v13 = vpop.permute.xlu0 %291 }
 0x42e   :  { %v296_v14 = vmul.f32 %v1377_v12, %v292_v13 }
 0x42f   :  { %v290_v16 = vpop.permute.xlu1 %289 }
 0x430   :  { %301 = vrot.lane.b32.xlu0 %v296_v14, %s1484_s26  ;;  %v295_v17 = vmul.f32 %v1379_v15, %v290_v16 }
 0x432   :  { %299 = vrot.lane.b32.xlu1 %v295_v17, %s1484_s26 }
 0x4a2   :  { %v302_v21 = vpop.permute.xlu0 %301 }
 0x4a3   :  { %v1604_v22 = vadd.f32 %v302_v21, %v286_v19 }
 0x4a4   :  { %v300_v24 = vpop.permute.xlu1 %299 }
 0x4a5   :  { %1380 = vtanh.f32 %v1604_v22  ;;  %v1607_v25 = vadd.f32 %v300_v24, %v285_v23  ;;  %v417_v8 = vrot.slane %v1604_v22, 7 }
 0x4a7   :  { %1382 = vtanh.f32 %v1607_v25  ;;  %v416_v7 = vrot.slane %v1607_v25, 7 }
 0x4af   :  { %v1381_v26 = vpop.eup %1380 }
 0x4b0   :  { %313 = vrot.lane.b32.xlu0 %v1381_v26, %s1485_s5 }
 0x4b1   :  { %v1383_v27 = vpop.eup %1382 }
 0x4b2   :  { %311 = vrot.lane.b32.xlu1 %v1383_v27, %s1485_s5 }
 0x522   :  { %v314_v28 = vpop.permute.xlu0 %313 }
 0x523   :  { %v318_v29 = vmul.f32 %v1377_v12, %v314_v28 }
 0x524   :  { %v312_v30 = vpop.permute.xlu1 %311 }
 0x525   :  { %v317_v31 = vmul.f32 %v1379_v15, %v312_v30  ;;  %v1612_v32 = vpack.c.bf16 %v318_v29, %v318_v29  ;;  %v477_v30 = vld [vmem:[%s1966_s0] sm:$0x2] }
 0x527   :  { %v1614_v33 = vpack.c.bf16 %v317_v31, %v317_v31  ;;  %v324_v35 = vunpack.c.l.b16 %v1612_v32  ;;  %v478_v31 = vld [vmem:[%s1966_s0 + $0x4] sm:$0x2] }
 0x529   :  { %v323_v34 = vunpack.c.l.b16 %v1614_v33 }
 0x52b   :  { %v345_v36 = vrot.slane %v323_v34, 1  ;;  %v479_v34 = vunpack.c.l.bf16 %v477_v30 }
 0x52d   :  { %v346_v37 = vsel %vm211_vm3, %v324_v35, %v345_v36  ;;  %v480_v35 = vunpack.c.l.bf16 %v478_v31 }
 0x52e   :  { %v347_v38 = vpack.c.b16 %v346_v37, %v346_v37 }
 0x530   :  { %348 = vrot.lane.b32.xlu1 %v347_v38, %s1484_s26 }
 0x5a2   :  { %v349_v39 = vpop.permute.xlu1 %348 }
 0x5a3   :  { %1304 = vmatmul.mubr.msk.bf16.vlgmr.msra.gmra.mrb[4].mxu0 %vm77_vm2, %v349_v39 }
 0x5a4   :  { %1316 = vmatpush3.bf16.msra.mxu0 %v1515_v0  ;;  %1319 = vmatprep.mubr.msk.bf16.mxu0 %vm1483_vm1, %v1482_v2 }
 0x5a5   :  { %1317 = vmatprep.subr.bf16.mxu0 %v1482_v2 }
 0x5a8   :  { %1318 = vmatpush3.bf16.msra.mxu0 %v1520_v1 }
 0x5a9   :  { %1331 = vmatprep.subr.bf16.mxu0 %v1482_v2 }
 0x676   :  { %v387_v45 = vpop.f32.mrb[4].mxu0 }
 0x677   :  { %v394_v46 = vrot.slane %v387_v45, 6  ;;  %v395_v47 = vrot.slane %v387_v45, 7  ;;  %v1305_v49 = vpop.f32.mrb[5].mxu0 }
 0x678   :  { %v390_v50 = vpop.f32.mrb[6].mxu0 }
 0x679   :  { %v398_v51 = vadd.f32 %v394_v46, %v343_v42  ;;  %v399_v52 = vadd.f32 %v395_v47, %v344_v43  ;;  %v1306_v53 = vpop.f32.mrb[7].mxu0 }
 0x67b   :  { %1384 = vtanh.f32 %v398_v51  ;;  %v1214_v56 = vmul.f32 -1.442695, %v398_v51  ;;  %v1215_v57 = vmul.f32 -1.442695, %v399_v52 }
 0x67c   :  { %1386 = vtanh.f32 %v399_v52 }
 0x67d   :  { %1388 = vpow2.f32 %v1214_v56 }
 0x67e   :  { %1390 = vpow2.f32 %v1215_v57 }
 0x685   :  { %v1385_v54 = vpop.eup %1384 }
 0x686   :  { %v1387_v55 = vpop.eup %1386  ;;  %424 = vrot.lane.b32.xlu0 %v1385_v54, %s1485_s5 }
 0x687   :  { %426 = vrot.lane.b32.xlu1 %v1387_v55, %s1485_s5  ;;  %v1389_v58 = vpop.eup %1388 }
 0x688   :  { %v1391_v59 = vpop.eup %1390  ;;  %v406_v60 = vadd.f32 1.0, %v1389_v58 }
 0x689   :  { %v407_v61 = vadd.f32 1.0, %v1391_v59 }
 0x68a   :  { %1392 = vrcp.f32 %v406_v60 }
 0x68b   :  { %1394 = vrcp.f32 %v407_v61 }
 0x694   :  { %v1393_v62 = vpop.eup %1392 }
 0x695   :  { %v1395_v3 = vpop.eup %1394  ;;  %v420_v9 = vmul.f32 %v1393_v62, %v416_v7 }
 0x696   :  { %v421_v10 = vmul.f32 %v1395_v3, %v417_v8 }
 0x6f8   :  { %v425_v63 = vpop.permute.xlu0 %424 }
 0x6f9   :  { %v427_v4 = vpop.permute.xlu1 %426  ;;  %v430_v5 = vmul.f32 %v1393_v62, %v425_v63 }
 0x6fa   :  { %v431_v6 = vmul.f32 %v1395_v3, %v427_v4 }
 0x6fb   :  { %434 = vrot.lane.b32.xlu0 %v430_v5, %s1484_s26 }
 0x6fc   :  { %436 = vrot.lane.b32.xlu1 %v431_v6, %s1484_s26 }
 0x76d   :  { %v435_v11 = vpop.permute.xlu0 %434 }
 0x76e   :  { %v437_v12 = vpop.permute.xlu1 %436  ;;  %v1639_v13 = vadd.f32 %v435_v11, %v420_v9 }
 0x76f   :  { %v1641_v14 = vadd.f32 %v437_v12, %v421_v10 }
 0x770   :  { %1396 = vtanh.f32 %v1639_v13  ;;  %v553_v60 = vrot.slane %v1639_v13, 7 }
 0x771   :  { %1398 = vtanh.f32 %v1641_v14  ;;  %v554_v61 = vrot.slane %v1641_v14, 7 }
 0x77a   :  { %v1397_v15 = vpop.eup %1396 }
 0x77b   :  { %v1399_v16 = vpop.eup %1398  ;;  %446 = vrot.lane.b32.xlu0 %v1397_v15, %s1485_s5 }
 0x77c   :  { %448 = vrot.lane.b32.xlu1 %v1399_v16, %s1485_s5 }
 0x7ed   :  { %v447_v17 = vpop.permute.xlu0 %446 }
 0x7ee   :  { %v449_v18 = vpop.permute.xlu1 %448  ;;  %v452_v19 = vmul.f32 %v1393_v62, %v447_v17 }
 0x7ef   :  { %v453_v20 = vmul.f32 %v1395_v3, %v449_v18 }
 0x7f0   :  { %v1647_v21 = vpack.c.bf16 %v452_v19, %v452_v19 }
 0x7f1   :  { %v1649_v22 = vpack.c.bf16 %v453_v20, %v453_v20 }
 0x7f2   :  { %v458_v23 = vunpack.c.l.b16 %v1647_v21 }
 0x7f3   :  { %v459_v24 = vunpack.c.l.b16 %v1649_v22 }
 0x7f4   :  { %v481_v25 = vrot.slane %v458_v23, 2 }
 0x7f5   :  { %v482_v26 = vrot.slane %v459_v24, 1  ;;  %v613_v24 = vld [vmem:[%s1966_s0] sm:$0x4] }
 0x7f7   :  { %v483_v27 = vsel %vm211_vm3, %v482_v26, %v481_v25  ;;  %v614_v25 = vld [vmem:[%s1966_s0 + $0x4] sm:$0x4]  ;;  %v615_v26 = vunpack.c.l.bf16 %v613_v24 }
 0x7f8   :  { %v484_v28 = vpack.c.b16 %v483_v27, %v483_v27  ;;  %v616_v27 = vunpack.c.l.bf16 %v614_v25 }
 0x7fa   :  { %485 = vrot.lane.b32.xlu0 %v484_v28, %s1484_s26 }
 0x86c   :  { %v486_v29 = vpop.permute.xlu0 %485 }
 0x86d   :  { %1312 = vmatmul.mubr.msk.bf16.vlgmr.msra.gmra.mrb[4].mxu1 %vm77_vm2, %v486_v29 }
 0x86e   :  { %1324 = vmatpush3.bf16.msra.mxu1 %v1515_v0  ;;  %1327 = vmatprep.mubr.msk.bf16.mxu1 %vm1483_vm1, %v1482_v2 }
 0x86f   :  { %1325 = vmatprep.subr.bf16.mxu1 %v1482_v2 }
 0x872   :  { %1326 = vmatpush3.bf16.msra.mxu1 %v1520_v1 }
 0x873   :  { %1339 = vmatprep.subr.bf16.mxu1 %v1482_v2 }
 0x940   :  { %v524_v36 = vpop.f32.mrb[4].mxu1 }
 0x941   :  { %v531_v37 = vrot.slane %v524_v36, 5  ;;  %v532_v38 = vrot.slane %v524_v36, 6  ;;  %v1313_v39 = vpop.f32.mrb[5].mxu1 }
 0x942   :  { %v527_v40 = vpop.f32.mrb[6].mxu1 }
 0x943   :  { %v535_v41 = vadd.f32 %v531_v37, %v479_v34  ;;  %v536_v42 = vadd.f32 %v532_v38, %v480_v35  ;;  %v1314_v43 = vpop.f32.mrb[7].mxu1 }
 0x945   :  { %1400 = vtanh.f32 %v535_v41  ;;  %v1219_v47 = vmul.f32 -1.442695, %v535_v41  ;;  %v1220_v49 = vmul.f32 -1.442695, %v536_v42 }
 0x946   :  { %1402 = vtanh.f32 %v536_v42 }
 0x947   :  { %1404 = vpow2.f32 %v1219_v47 }
 0x948   :  { %1406 = vpow2.f32 %v1220_v49 }
 0x94f   :  { %v1401_v45 = vpop.eup %1400 }
 0x950   :  { %v1403_v46 = vpop.eup %1402  ;;  %561 = vrot.lane.b32.xlu1 %v1401_v45, %s1485_s5 }
 0x951   :  { %563 = vrot.lane.b32.xlu0 %v1403_v46, %s1485_s5  ;;  %v1405_v50 = vpop.eup %1404 }
 0x952   :  { %v1407_v51 = vpop.eup %1406  ;;  %v543_v52 = vadd.f32 1.0, %v1405_v50 }
 0x953   :  { %v544_v53 = vadd.f32 1.0, %v1407_v51 }
 0x954   :  { %1408 = vrcp.f32 %v543_v52 }
 0x955   :  { %1410 = vrcp.f32 %v544_v53 }
 0x95e   :  { %v1409_v54 = vpop.eup %1408 }
 0x95f   :  { %v1411_v56 = vpop.eup %1410  ;;  %v557_v62 = vmul.f32 %v1409_v54, %v553_v60 }
 0x960   :  { %v558_v63 = vmul.f32 %v1411_v56, %v554_v61 }
 0x9c2   :  { %v562_v55 = vpop.permute.xlu1 %561 }
 0x9c3   :  { %v564_v57 = vpop.permute.xlu0 %563  ;;  %v567_v58 = vmul.f32 %v1409_v54, %v562_v55 }
 0x9c4   :  { %v568_v59 = vmul.f32 %v1411_v56, %v564_v57 }
 0x9c5   :  { %571 = vrot.lane.b32.xlu1 %v567_v58, %s1484_s26 }
 0x9c6   :  { %573 = vrot.lane.b32.xlu0 %v568_v59, %s1484_s26 }
 0xa37   :  { %v572_v3 = vpop.permute.xlu1 %571 }
 0xa38   :  { %v574_v4 = vpop.permute.xlu0 %573  ;;  %v1674_v5 = vadd.f32 %v572_v3, %v557_v62 }
 0xa39   :  { %v1676_v6 = vadd.f32 %v574_v4, %v558_v63 }
 0xa3a   :  { %1412 = vtanh.f32 %v1674_v5 }
 0xa3b   :  { %1414 = vtanh.f32 %v1676_v6  ;;  %v690_v55 = vrot.slane %v1676_v6, 7 }
 0xa44   :  { %v1413_v7 = vpop.eup %1412 }
 0xa45   :  { %v1415_v8 = vpop.eup %1414  ;;  %583 = vrot.lane.b32.xlu1 %v1413_v7, %s1485_s5 }
 0xa46   :  { %585 = vrot.lane.b32.xlu0 %v1415_v8, %s1485_s5 }
 0xab7   :  { %v584_v9 = vpop.permute.xlu1 %583 }
 0xab8   :  { %v586_v10 = vpop.permute.xlu0 %585  ;;  %v589_v11 = vmul.f32 %v1409_v54, %v584_v9  ;;  %v689_v54 = vrot.slane %v1674_v5, 7 }
 0xab9   :  { %v590_v12 = vmul.f32 %v1411_v56, %v586_v10 }
 0xaba   :  { %v1682_v13 = vpack.c.bf16 %v589_v11, %v589_v11 }
 0xabb   :  { %v1684_v14 = vpack.c.bf16 %v590_v12, %v590_v12 }
 0xabc   :  { %v595_v15 = vunpack.c.l.b16 %v1682_v13 }
 0xabd   :  { %v596_v16 = vunpack.c.l.b16 %v1684_v14 }
 0xabe   :  { %v617_v17 = vrot.slane %v595_v15, 3 }
 0xabf   :  { %v618_v18 = vrot.slane %v596_v16, 2 }
 0xac1   :  { %v619_v19 = vsel %vm211_vm3, %v618_v18, %v617_v17  ;;  %v750_v18 = vld [vmem:[%s1966_s0] sm:$0x4] }
 0xac2   :  { %v620_v20 = vpack.c.b16 %v619_v19, %v619_v19  ;;  %v751_v19 = vld [vmem:[%s1966_s0 + $0x4] sm:$0x4] }
 0xac4   :  { %621 = vrot.lane.b32.xlu1 %v620_v20, %s1484_s26  ;;  %v752_v20 = vunpack.c.l.bf16 %v750_v18 }
 0xb36   :  { %v622_v23 = vpop.permute.xlu1 %621 }
 0xb37   :  { %1320 = vmatmul.mubr.msk.bf16.vlgmr.msra.gmra.mrb[8].mxu0 %vm77_vm2, %v622_v23  ;;  %v753_v23 = vunpack.c.l.bf16 %v751_v19 }
 0xb38   :  { %1332 = vmatpush3.bf16.msra.mxu0 %v1515_v0  ;;  %1335 = vmatprep.mubr.msk.bf16.mxu0 %vm1483_vm1, %v1482_v2 }
 0xb39   :  { %1333 = vmatprep.subr.bf16.mxu0 %v1482_v2 }
 0xb3c   :  { %1334 = vmatpush3.bf16.msra.mxu0 %v1520_v1 }
 0xc0a   :  { %v660_v28 = vpop.f32.mrb[8].mxu0 }
 0xc0b   :  { %v667_v29 = vrot.slane %v660_v28, 4  ;;  %v668_v30 = vrot.slane %v660_v28, 5  ;;  %v1321_v31 = vpop.f32.mrb[9].mxu0 }
 0xc0c   :  { %v663_v34 = vpop.f32.mrb[10].mxu0 }
 0xc0d   :  { %v671_v35 = vadd.f32 %v667_v29, %v615_v26  ;;  %v672_v36 = vadd.f32 %v668_v30, %v616_v27  ;;  %v1322_v37 = vpop.f32.mrb[11].mxu0 }
 0xc0f   :  { %1416 = vtanh.f32 %v671_v35  ;;  %v1224_v40 = vmul.f32 -1.442695, %v671_v35  ;;  %v1225_v41 = vmul.f32 -1.442695, %v672_v36 }
 0xc10   :  { %1418 = vtanh.f32 %v672_v36 }
 0xc11   :  { %1420 = vpow2.f32 %v1224_v40 }
 0xc12   :  { %1422 = vpow2.f32 %v1225_v41 }
 0xc19   :  { %v1417_v38 = vpop.eup %1416 }
 0xc1a   :  { %v1419_v39 = vpop.eup %1418  ;;  %697 = vrot.lane.b32.xlu0 %v1417_v38, %s1485_s5 }
 0xc1b   :  { %699 = vrot.lane.b32.xlu1 %v1419_v39, %s1485_s5  ;;  %v1421_v42 = vpop.eup %1420 }
 0xc1c   :  { %v1423_v43 = vpop.eup %1422  ;;  %v679_v45 = vadd.f32 1.0, %v1421_v42 }
 0xc1d   :  { %v680_v46 = vadd.f32 1.0, %v1423_v43 }
 0xc1e   :  { %1424 = vrcp.f32 %v679_v45 }
 0xc1f   :  { %1426 = vrcp.f32 %v680_v46 }
 0xc28   :  { %v1425_v47 = vpop.eup %1424 }
 0xc29   :  { %v1427_v50 = vpop.eup %1426  ;;  %v693_v56 = vmul.f32 %v1425_v47, %v689_v54 }
 0xc2a   :  { %v694_v57 = vmul.f32 %v1427_v50, %v690_v55 }
 0xc8c   :  { %v698_v49 = vpop.permute.xlu0 %697 }
 0xc8d   :  { %v700_v51 = vpop.permute.xlu1 %699  ;;  %v703_v52 = vmul.f32 %v1425_v47, %v698_v49 }
 0xc8e   :  { %v704_v53 = vmul.f32 %v1427_v50, %v700_v51 }
 0xc8f   :  { %707 = vrot.lane.b32.xlu0 %v703_v52, %s1484_s26 }
 0xc90   :  { %709 = vrot.lane.b32.xlu1 %v704_v53, %s1484_s26 }
 0xd01   :  { %v708_v58 = vpop.permute.xlu0 %707 }
 0xd02   :  { %v710_v59 = vpop.permute.xlu1 %709  ;;  %v1708_v60 = vadd.f32 %v708_v58, %v693_v56 }
 0xd03   :  { %v1710_v61 = vadd.f32 %v710_v59, %v694_v57 }
 0xd04   :  { %1428 = vtanh.f32 %v1708_v60  ;;  %v826_v46 = vrot.slane %v1708_v60, 7 }
 0xd05   :  { %1430 = vtanh.f32 %v1710_v61 }
 0xd0e   :  { %v1429_v62 = vpop.eup %1428 }
 0xd0f   :  { %v1431_v63 = vpop.eup %1430  ;;  %719 = vrot.lane.b32.xlu0 %v1429_v62, %s1485_s5 }
 0xd10   :  { %721 = vrot.lane.b32.xlu1 %v1431_v63, %s1485_s5 }
 0xd81   :  { %v720_v3 = vpop.permute.xlu0 %719 }
 0xd82   :  { %v722_v4 = vpop.permute.xlu1 %721  ;;  %v725_v5 = vmul.f32 %v1425_v47, %v720_v3  ;;  %v827_v47 = vrot.slane %v1710_v61, 7 }
 0xd83   :  { %v726_v6 = vmul.f32 %v1427_v50, %v722_v4 }
 0xd84   :  { %v1716_v7 = vpack.c.bf16 %v725_v5, %v725_v5 }
 0xd85   :  { %v1718_v8 = vpack.c.bf16 %v726_v6, %v726_v6 }
 0xd86   :  { %v731_v9 = vunpack.c.l.b16 %v1716_v7 }
 0xd87   :  { %v732_v10 = vunpack.c.l.b16 %v1718_v8 }
 0xd88   :  { %v754_v11 = vrot.slane %v731_v9, 4 }
 0xd89   :  { %v755_v12 = vrot.slane %v732_v10, 3 }
 0xd8b   :  { %v756_v15 = vsel %vm211_vm3, %v755_v12, %v754_v11  ;;  %v886_v11 = vld [vmem:[%s1966_s0] sm:$0x8]  ;;  %v887_v12 = vld [vmem:[%s1966_s0 + $0x4] sm:$0x8] }
 0xd8c   :  { %v757_v16 = vpack.c.b16 %v756_v15, %v756_v15  ;;  %v888_v15 = vunpack.c.l.bf16 %v886_v11 }
 0xd8e   :  { %758 = vrot.lane.b32.xlu0 %v757_v16, %s1484_s26  ;;  %v889_v16 = vunpack.c.l.bf16 %v887_v12 }
 0xe00   :  { %v759_v17 = vpop.permute.xlu0 %758 }
 0xe01   :  { %1328 = vmatmul.mubr.msk.bf16.vlgmr.msra.gmra.mrb[8].mxu1 %vm77_vm2, %v759_v17 }
 0xe02   :  { %1340 = vmatpush3.bf16.msra.mxu1 %v1515_v0  ;;  %1343 = vmatprep.mubr.msk.bf16.mxu1 %vm1483_vm1, %v1482_v2  ;;  %vm334_vm1 = vmand %vm197_vm4, %vm333_vm0 }
 0xe03   :  { %1341 = vmatprep.subr.bf16.mxu1 %v1482_v2 }
 0xe06   :  { %1342 = vmatpush3.bf16.msra.mxu1 %v1520_v1 }
 0xed4   :  { %v797_v24 = vpop.f32.mrb[8].mxu1 }
 0xed5   :  { %v804_v25 = vrot.slane %v797_v24, 3  ;;  %v805_v0 = vrot.slane %v797_v24, 4  ;;  %v1329_v26 = vpop.f32.mrb[9].mxu1 }
 0xed6   :  { %v800_v27 = vpop.f32.mrb[10].mxu1 }
 0xed7   :  { %v808_v28 = vadd.f32 %v804_v25, %v752_v20  ;;  %v809_v29 = vadd.f32 %v805_v0, %v753_v23  ;;  %v1330_v2 = vpop.f32.mrb[11].mxu1 }
 0xed9   :  { %1432 = vtanh.f32 %v808_v28  ;;  %v1229_v31 = vmul.f32 -1.442695, %v808_v28  ;;  %v1230_v34 = vmul.f32 -1.442695, %v809_v29 }
 0xeda   :  { %1434 = vtanh.f32 %v809_v29 }
 0xedb   :  { %1436 = vpow2.f32 %v1229_v31 }
 0xedc   :  { %1438 = vpow2.f32 %v1230_v34 }
 0xee3   :  { %v1433_v1 = vpop.eup %1432 }
 0xee4   :  { %v1435_v30 = vpop.eup %1434  ;;  %834 = vrot.lane.b32.xlu1 %v1433_v1, %s1485_s5 }
 0xee5   :  { %836 = vrot.lane.b32.xlu0 %v1435_v30, %s1485_s5  ;;  %v1437_v35 = vpop.eup %1436 }
 0xee6   :  { %v1439_v36 = vpop.eup %1438  ;;  %v816_v37 = vadd.f32 1.0, %v1437_v35 }
 0xee7   :  { %v817_v38 = vadd.f32 1.0, %v1439_v36 }
 0xee8   :  { %1440 = vrcp.f32 %v816_v37 }
 0xee9   :  { %1442 = vrcp.f32 %v817_v38 }
 0xef2   :  { %v1441_v39 = vpop.eup %1440 }
 0xef3   :  { %v1443_v41 = vpop.eup %1442  ;;  %v830_v49 = vmul.f32 %v1441_v39, %v826_v46 }
 0xef4   :  { %v831_v50 = vmul.f32 %v1443_v41, %v827_v47 }
 0xf56   :  { %v835_v40 = vpop.permute.xlu1 %834 }
 0xf57   :  { %v837_v42 = vpop.permute.xlu0 %836  ;;  %v840_v43 = vmul.f32 %v1441_v39, %v835_v40 }
 0xf58   :  { %v841_v45 = vmul.f32 %v1443_v41, %v837_v42 }
 0xf59   :  { %844 = vrot.lane.b32.xlu1 %v840_v43, %s1484_s26 }
 0xf5a   :  { %846 = vrot.lane.b32.xlu0 %v841_v45, %s1484_s26 }
 0xfcb   :  { %v845_v51 = vpop.permute.xlu1 %844 }
 0xfcc   :  { %v847_v52 = vpop.permute.xlu0 %846  ;;  %v850_v53 = vadd.f32 %v845_v51, %v830_v49 }
 0xfcd   :  { %v851_v54 = vadd.f32 %v847_v52, %v831_v50 }
 0xfce   :  { %1444 = vtanh.f32 %v850_v53  ;;  %v962_v40 = vrot.slane %v850_v53, 7 }
 0xfcf   :  { %1446 = vtanh.f32 %v851_v54 }
 0xfd8   :  { %v1445_v55 = vpop.eup %1444 }
 0xfd9   :  { %v1447_v56 = vpop.eup %1446  ;;  %856 = vrot.lane.b32.xlu1 %v1445_v55, %s1485_s5 }
 0xfda   :  { %858 = vrot.lane.b32.xlu0 %v1447_v56, %s1485_s5 }
0x104b   :  { %v857_v57 = vpop.permute.xlu1 %856 }
0x104c   :  { %v859_v58 = vpop.permute.xlu0 %858  ;;  %v862_v59 = vmul.f32 %v1441_v39, %v857_v57 }
0x104d   :  { %v863_v60 = vmul.f32 %v1443_v41, %v859_v58  ;;  %v963_v41 = vrot.slane %v851_v54, 7 }
0x104e   :  { %v1744_v62 = vpack.c.bf16 %v862_v59, %v862_v59 }
0x104f   :  { %v1746_v61 = vpack.c.bf16 %v863_v60, %v863_v60 }
0x1050   :  { %v868_v63 = vunpack.c.l.b16 %v1744_v62 }
0x1051   :  { %v869_v3 = vunpack.c.l.b16 %v1746_v61 }
0x1052   :  { %v890_v4 = vrot.slane %v868_v63, 5 }
0x1053   :  { %v891_v5 = vrot.slane %v869_v3, 4 }
0x1055   :  { %v892_v6 = vsel %vm211_vm3, %v891_v5, %v890_v4 }
0x1056   :  { %v893_v9 = vpack.c.b16 %v892_v6, %v892_v6  ;;  %v1023_v6 = vld [vmem:[%s1966_s0] sm:$0x8] }
0x1058   :  { %894 = vrot.lane.b32.xlu1 %v893_v9, %s1484_s26  ;;  %v1024_v9 = vld [vmem:[%s1966_s0 + $0x4] sm:$0x8] }
0x1059   :  { %v1026_v11 = vunpack.c.l.bf16 %v1024_v9  ;;  %v1017_v9 = vld [vmem:[%s1968_s2] sm:$0x8] }
0x10ca   :  { %v895_v10 = vpop.permute.xlu1 %894 }
0x10cb   :  { %1336 = vmatmul.mubr.msk.bf16.vlgmr.msra.gmra.mrb[12].mxu0 %vm77_vm2, %v895_v10  ;;  %v1025_v10 = vunpack.c.l.bf16 %v1023_v6 }
0x119e   :  { %v933_v17 = vpop.f32.mrb[12].mxu0 }
0x119f   :  { %v940_v18 = vrot.slane %v933_v17, 2  ;;  %v941_v19 = vrot.slane %v933_v17, 3  ;;  %v1337_v20 = vpop.f32.mrb[13].mxu0 }
0x11a0   :  { %v936_v23 = vpop.f32.mrb[14].mxu0 }
0x11a1   :  { %v944_v24 = vadd.f32 %v940_v18, %v888_v15  ;;  %v945_v25 = vadd.f32 %v941_v19, %v889_v16  ;;  %v1338_v0 = vpop.f32.mrb[15].mxu0 }
0x11a3   :  { %1448 = vtanh.f32 %v944_v24  ;;  %v1234_v28 = vmul.f32 -1.442695, %v944_v24  ;;  %v1235_v29 = vmul.f32 -1.442695, %v945_v25 }
0x11a4   :  { %1450 = vtanh.f32 %v945_v25 }
0x11a5   :  { %1452 = vpow2.f32 %v1234_v28 }
0x11a6   :  { %1454 = vpow2.f32 %v1235_v29 }
0x11ad   :  { %v1449_v26 = vpop.eup %1448 }
0x11ae   :  { %v1451_v27 = vpop.eup %1450  ;;  %970 = vrot.lane.b32.xlu0 %v1449_v26, %s1485_s5 }
0x11af   :  { %972 = vrot.lane.b32.xlu1 %v1451_v27, %s1485_s5  ;;  %v1453_v2 = vpop.eup %1452 }
0x11b0   :  { %v1455_v1 = vpop.eup %1454  ;;  %v952_v30 = vadd.f32 1.0, %v1453_v2 }
0x11b1   :  { %v953_v31 = vadd.f32 1.0, %v1455_v1 }
0x11b2   :  { %1456 = vrcp.f32 %v952_v30 }
0x11b3   :  { %1458 = vrcp.f32 %v953_v31 }
0x11bc   :  { %v1457_v34 = vpop.eup %1456 }
0x11bd   :  { %v1459_v36 = vpop.eup %1458  ;;  %v966_v42 = vmul.f32 %v1457_v34, %v962_v40 }
0x11be   :  { %v967_v43 = vmul.f32 %v1459_v36, %v963_v41 }
0x1220   :  { %v971_v35 = vpop.permute.xlu0 %970 }
0x1221   :  { %v973_v37 = vpop.permute.xlu1 %972  ;;  %v976_v38 = vmul.f32 %v1457_v34, %v971_v35 }
0x1222   :  { %v977_v39 = vmul.f32 %v1459_v36, %v973_v37 }
0x1223   :  { %980 = vrot.lane.b32.xlu0 %v976_v38, %s1484_s26 }
0x1224   :  { %982 = vrot.lane.b32.xlu1 %v977_v39, %s1484_s26 }
0x1295   :  { %v981_v45 = vpop.permute.xlu0 %980 }
0x1296   :  { %v983_v46 = vpop.permute.xlu1 %982  ;;  %v986_v47 = vadd.f32 %v981_v45, %v966_v42 }
0x1297   :  { %v987_v49 = vadd.f32 %v983_v46, %v967_v43 }
0x1298   :  { %1460 = vtanh.f32 %v986_v47  ;;  %v1099_v37 = vrot.slane %v986_v47, 7 }
0x1299   :  { %1462 = vtanh.f32 %v987_v49  ;;  %v1100_v38 = vrot.slane %v987_v49, 7 }
0x12a2   :  { %v1461_v50 = vpop.eup %1460 }
0x12a3   :  { %v1463_v51 = vpop.eup %1462  ;;  %992 = vrot.lane.b32.xlu0 %v1461_v50, %s1485_s5 }
0x12a4   :  { %994 = vrot.lane.b32.xlu1 %v1463_v51, %s1485_s5  ;;  %v471_v51 = vld [vmem:[%s1968_s2] sm:$0x2] }
0x1315   :  { %v993_v52 = vpop.permute.xlu0 %992 }
0x1316   :  { %v995_v55 = vpop.permute.xlu1 %994  ;;  %v998_v56 = vmul.f32 %v1457_v34, %v993_v52  ;;  %v474_v52 = vld [vmem:[%s1968_s2 + $0x4] sm:$0x2] }
0x1317   :  { %v999_v57 = vmul.f32 %v1459_v36, %v995_v55 }
0x1318   :  { %v1765_v53 = vpack.c.bf16 %v998_v56, %v998_v56 }
0x1319   :  { %v1767_v54 = vpack.c.bf16 %v999_v57, %v999_v57 }
0x131a   :  { %v1004_v58 = vunpack.c.l.b16 %v1765_v53 }
0x131b   :  { %v1005_v59 = vunpack.c.l.b16 %v1767_v54 }
0x131c   :  { %v1027_v60 = vrot.slane %v1004_v58, 6 }
0x131d   :  { %v1028_v63 = vrot.slane %v1005_v59, 5  ;;  %v744_v59 = vld [vmem:[%s1968_s2] sm:$0x4] }
0x131f   :  { %v1029_v3 = vsel %vm211_vm3, %v1028_v63, %v1027_v60  ;;  %v747_v60 = vld [vmem:[%s1968_s2 + $0x4] sm:$0x4] }
0x1320   :  { %v1030_v4 = vpack.c.b16 %v1029_v3, %v1029_v3 }
0x1322   :  { %1031 = vrot.lane.b32.xlu0 %v1030_v4, %s1484_s26 }
0x1394   :  { %v1032_v5 = vpop.permute.xlu0 %1031 }
0x1395   :  { %1344 = vmatmul.mubr.msk.bf16.vlgmr.msra.gmra.mrb[12].mxu1 %vm77_vm2, %v1032_v5  ;;  %vm605_vm2 = vsmask.f32 7942 }
0x1396   :  { %vm606_vm3 = vmand %vm468_vm7, %vm605_vm2  ;;  %vm1168_vm7 = vcmask 261127  }
0x1468   :  { %v1070_v12 = vpop.f32.mrb[12].mxu1 }
0x1469   :  { %v1077_v15 = vrot.slane %v1070_v12, 1  ;;  %v1078_v16 = vrot.slane %v1070_v12, 2  ;;  %v1345_v17 = vpop.f32.mrb[13].mxu1 }
0x146a   :  { %v1073_v18 = vpop.f32.mrb[14].mxu1 }
0x146b   :  { %v1081_v19 = vadd.f32 %v1077_v15, %v1025_v10  ;;  %v1082_v20 = vadd.f32 %v1078_v16, %v1026_v11  ;;  %v1346_v23 = vpop.f32.mrb[15].mxu1  ;;  %v1020_v10 = vld [vmem:[%s1968_s2 + $0x4] sm:$0x8] }
0x146d   :  { %1464 = vtanh.f32 %v1081_v19  ;;  %v1239_v0 = vmul.f32 -1.442695, %v1081_v19  ;;  %v1240_v26 = vmul.f32 -1.442695, %v1082_v20 }
0x146e   :  { %1466 = vtanh.f32 %v1082_v20 }
0x146f   :  { %1468 = vpow2.f32 %v1239_v0 }
0x1470   :  { %1470 = vpow2.f32 %v1240_v26 }
0x1477   :  { %v1465_v24 = vpop.eup %1464 }
0x1478   :  { %v1467_v25 = vpop.eup %1466  ;;  %1107 = vrot.lane.b32.xlu1 %v1465_v24, %s1485_s5 }
0x1479   :  { %1109 = vrot.lane.b32.xlu0 %v1467_v25, %s1485_s5  ;;  %v1469_v27 = vpop.eup %1468 }
0x147a   :  { %v1471_v28 = vpop.eup %1470  ;;  %v1089_v29 = vadd.f32 1.0, %v1469_v27 }
0x147b   :  { %v1090_v2 = vadd.f32 1.0, %v1471_v28 }
0x147c   :  { %1472 = vrcp.f32 %v1089_v29 }
0x147d   :  { %1474 = vrcp.f32 %v1090_v2 }
0x1486   :  { %v1473_v1 = vpop.eup %1472 }
0x1487   :  { %v1475_v31 = vpop.eup %1474  ;;  %v1103_v39 = vmul.f32 %v1473_v1, %v1099_v37 }
0x1488   :  { %v1104_v40 = vmul.f32 %v1475_v31, %v1100_v38 }
0x14ea   :  { %v1108_v30 = vpop.permute.xlu1 %1107 }
0x14eb   :  { %v1110_v34 = vpop.permute.xlu0 %1109  ;;  %v1113_v35 = vmul.f32 %v1473_v1, %v1108_v30 }
0x14ec   :  { %v1114_v36 = vmul.f32 %v1475_v31, %v1110_v34 }
0x14ed   :  { %1117 = vrot.lane.b32.xlu1 %v1113_v35, %s1484_s26 }
0x14ee   :  { %1119 = vrot.lane.b32.xlu0 %v1114_v36, %s1484_s26 }
0x155f   :  { %v1118_v41 = vpop.permute.xlu1 %1117 }
0x1560   :  { %v1120_v42 = vpop.permute.xlu0 %1119  ;;  %v1123_v43 = vadd.f32 %v1118_v41, %v1103_v39 }
0x1561   :  { %v1784_v45 = vadd.f32 %v1120_v42, %v1104_v40 }
0x1562   :  { %1476 = vtanh.f32 %v1123_v43 }
0x1563   :  { %1478 = vtanh.f32 %v1784_v45  ;;  %v1174_v63 = vrot.slane %v1784_v45, 7 }
0x156c   :  { %v1477_v46 = vpop.eup %1476 }
0x156d   :  { %v1479_v50 = vpop.eup %1478  ;;  %1129 = vrot.lane.b32.xlu1 %v1477_v46, %s1485_s5 }
0x156e   :  { %1131 = vrot.lane.b32.xlu0 %v1479_v50, %s1485_s5 }
0x1571   :  { %191 = vrot.lane.b32.xlu1 %v1580_v48, %s1484_s26 }
0x1572   :  { %193 = vrot.lane.b32.xlu0 %v1577_v44, %s1484_s26 }
0x1575   :  { %462 = vrot.lane.b32.xlu1 %v1647_v21, %s1484_s26 }
0x1576   :  { %464 = vrot.lane.b32.xlu0 %v1649_v22, %s1484_s26  ;;  %v200_v22 = vld [vmem:[%s1968_s2] sm:$0x1] }
0x1579   :  { %735 = vrot.lane.b32.xlu1 %v1716_v7, %s1484_s26 }
0x157a   :  { %737 = vrot.lane.b32.xlu0 %v1718_v8, %s1484_s26 }
0x157d   :  { %1008 = vrot.lane.b32.xlu1 %v1765_v53, %s1484_s26 }
0x157e   :  { %1010 = vrot.lane.b32.xlu0 %v1767_v54, %s1484_s26 }
0x1581   :  { %327 = vrot.lane.b32.xlu1 %v1614_v33, %s1484_s26 }
0x1582   :  { %329 = vrot.lane.b32.xlu0 %v1612_v32, %s1484_s26 }
0x1585   :  { %599 = vrot.lane.b32.xlu1 %v1682_v13, %s1484_s26  ;;  %v203_v13 = vld [vmem:[%s1968_s2 + $0x4] sm:$0x1] }
0x1586   :  { %601 = vrot.lane.b32.xlu0 %v1684_v14, %s1484_s26 }
0x1589   :  { %872 = vrot.lane.b32.xlu1 %v1744_v62, %s1484_s26 }
0x158a   :  { %874 = vrot.lane.b32.xlu0 %v1746_v61, %s1484_s26 }
0x15df   :  { %v1130_v44 = vpop.permute.xlu1 %1129 }
0x15e0   :  { %v1132_v48 = vpop.permute.xlu0 %1131  ;;  %v1135_v33 = vmul.f32 %v1473_v1, %v1130_v44 }
0x15e1   :  { %v1136_v21 = vmul.f32 %v1475_v31, %v1132_v48 }
0x15e2   :  { %1162 = vrot.lane.b32.xlu1 %v1135_v33, %s1484_s26  ;;  %v1257_v8 = vpack.c.bf16 %v1135_v33, %v1135_v33 }
0x15e3   :  { %v1258_v14 = vpack.c.bf16 %v1136_v21, %v1136_v21  ;;  %v192_v7 = vpop.permute.xlu1 %191  ;;  %v1161_v55 = vrot.slane %v1136_v21, 7 }
0x15e4   :  { %v194_v62 = vpop.permute.xlu0 %193  ;;  %v201_v61 = vsel %vm1818_vm6, %v192_v7, %v200_v22 }
0x15e5   :  { %v204_v47 = vsel %vm1818_vm6, %v194_v62, %v203_v13  ;;  %202 = vst [vmem:[%s1968_s2] sm:$0x1] %v201_v61  ;;  %1147 = vrot.lane.b32.xlu0 %v1258_v14, %s1484_s26  ;;  %vm879_vm6 = vmand %vm741_vm10, %vm878_vm5 }
0x15e6   :  { %205 = vst [vmem:[%s1968_s2 + $0x4] sm:$0x1] %v204_v47  ;;  %1145 = vrot.lane.b32.xlu1 %v1257_v8, %s1484_s26 }
0x15e7   :  { %v463_v56 = vpop.permute.xlu1 %462 }
0x15e8   :  { %v465_v57 = vpop.permute.xlu0 %464  ;;  %v472_v53 = vsel %vm1838_vm9, %v463_v56, %v471_v51 }
0x15e9   :  { %v475_v54 = vsel %vm1838_vm9, %v465_v57, %v474_v52  ;;  %473 = vst [vmem:[%s1968_s2] sm:$0x2] %v472_v53  ;;  %1164 = vrot.lane.b32.xlu0 %v1161_v55, %s1484_s26  ;;  %vm1152_vm9 = vmand %vm1014_vm13, %vm1151_vm8 }
0x15ea   :  { %476 = vst [vmem:[%s1968_s2 + $0x4] sm:$0x2] %v475_v54  ;;  %1175 = vrot.lane.b32.xlu1 %v1123_v43, %s1486_s24 }
0x15eb   :  { %v736_v3 = vpop.permute.xlu1 %735 }
0x15ec   :  { %v738_v4 = vpop.permute.xlu0 %737  ;;  %v745_v5 = vsel %vm1861_vm12, %v736_v3, %v744_v59  ;;  %v335_v17 = vld [vmem:[%s1968_s2] sm:$0x1] }
0x15ed   :  { %v748_v6 = vsel %vm1861_vm12, %v738_v4, %v747_v60  ;;  %746 = vst [vmem:[%s1968_s2] sm:$0x4] %v745_v5  ;;  %1177 = vrot.lane.b32.xlu0 %v1174_v63, %s1486_s24  ;;  %v338_v19 = vld [vmem:[%s1968_s2 + $0x4] sm:$0x1] }
0x15ee   :  { %749 = vst [vmem:[%s1968_s2 + $0x4] sm:$0x4] %v748_v6 }
0x15ef   :  { %v1009_v11 = vpop.permute.xlu1 %1008 }
0x15f0   :  { %v1011_v12 = vpop.permute.xlu0 %1010  ;;  %v1018_v15 = vsel %vm1016_vm15, %v1009_v11, %v1017_v9  ;;  %v607_v25 = vld [vmem:[%s1968_s2] sm:$0x2] }
0x15f1   :  { %v1021_v16 = vsel %vm1016_vm15, %v1011_v12, %v1020_v10  ;;  %1019 = vst [vmem:[%s1968_s2] sm:$0x8] %v1018_v15  ;;  %v610_v26 = vld [vmem:[%s1968_s2 + $0x4] sm:$0x2] }
0x15f2   :  { %1022 = vst [vmem:[%s1968_s2 + $0x4] sm:$0x8] %v1021_v16 }
0x15f3   :  { %v328_v18 = vpop.permute.xlu1 %327 }
0x15f4   :  { %v330_v20 = vpop.permute.xlu0 %329  ;;  %v336_v23 = vsel %vm334_vm1, %v328_v18, %v335_v17  ;;  %v880_v2 = vld [vmem:[%s1968_s2] sm:$0x4] }
0x15f5   :  { %v339_v24 = vsel %vm334_vm1, %v330_v20, %v338_v19  ;;  %337 = vst [vmem:[%s1968_s2] sm:$0x1] %v336_v23  ;;  %v883_v30 = vld [vmem:[%s1968_s2 + $0x4] sm:$0x4] }
0x15f6   :  { %340 = vst [vmem:[%s1968_s2 + $0x4] sm:$0x1] %v339_v24 }
0x15f7   :  { %v600_v0 = vpop.permute.xlu1 %599 }
0x15f8   :  { %v602_v27 = vpop.permute.xlu0 %601  ;;  %v608_v28 = vsel %vm606_vm3, %v600_v0, %v607_v25  ;;  %v1153_v40 = vld [vmem:[%s1968_s2] sm:$0x8] }
0x15f9   :  { %v611_v29 = vsel %vm606_vm3, %v602_v27, %v610_v26  ;;  %609 = vst [vmem:[%s1968_s2] sm:$0x2] %v608_v28  ;;  %v1156_v37 = vld [vmem:[%s1968_s2 + $0x4] sm:$0x8] }
0x15fa   :  { %612 = vst [vmem:[%s1968_s2 + $0x4] sm:$0x2] %v611_v29 }
0x15fb   :  { %v873_v1 = vpop.permute.xlu1 %872 }
0x15fc   :  { %v875_v31 = vpop.permute.xlu0 %874  ;;  %v881_v34 = vsel %vm879_vm6, %v873_v1, %v880_v2 }
0x15fd   :  { %v884_v35 = vsel %vm879_vm6, %v875_v31, %v883_v30  ;;  %882 = vst [vmem:[%s1968_s2] sm:$0x4] %v881_v34 }
0x15fe   :  { %885 = vst [vmem:[%s1968_s2 + $0x4] sm:$0x4] %v884_v35 }
0x1654   :  { %v1163_v36 = vpop.permute.xlu1 %1162 }
0x1655   :  { %1169 = vst.msk [vmem:[%s1969_s3 - $0x7] sm:$0x80] %vm1168_vm7, %v1163_v36 }
0x1657   :  { %v1148_v38 = vpop.permute.xlu0 %1147 }
0x1658   :  { %v1157_v39 = vsel %vm1152_vm9, %v1148_v38, %v1156_v37  ;;  %v1146_v41 = vpop.permute.xlu1 %1145 }
0x1659   :  { %1158 = vst [vmem:[%s1968_s2 + $0x4] sm:$0x8] %v1157_v39  ;;  %v1154_v42 = vsel %vm1152_vm9, %v1146_v41, %v1153_v40 }
0x165a   :  { %1155 = vst [vmem:[%s1968_s2] sm:$0x8] %v1154_v42 }
0x165b   :  { %v1165_v43 = vpop.permute.xlu0 %1164 }
0x165c   :  { %1171 = vst.msk [vmem:[%s1969_s3 + $0x1] sm:$0x1] %vm197_vm4, %v1165_v43  ;;  %v1176_v45 = vpop.permute.xlu1 %1175 }
0x165d   :  { %1181 = vst.msk [vmem:[%s1970_s4 - $0x7] sm:$0x80] %vm1168_vm7, %v1176_v45 }
0x165f   :  { %v1178_v46 = vpop.permute.xlu0 %1177 }
0x1660   :  { %1182 = vst.msk [vmem:[%s1970_s4 + $0x1] sm:$0x1] %vm197_vm4, %v1178_v46 }

</bundles_post_ra>
